<compile_context>
chip_gen: v7x
topology: tpu7x:2x2x1
jax: 0.10.0
libtpu: 0.0.40
codegen_flags: <defaults>
</compile_context>

<pallas_src>
import functools

import jax
import jax.numpy as jnp
import numpy as np
from jax.experimental import pallas as pl
from jax.experimental.pallas import tpu as pltpu


# ---------------------------------------------------------------------------
# Kernel
# ---------------------------------------------------------------------------
def transition_kernel(x_ref, scale_ref, shift_ref, w_ref, b_ref, o_ref):
    """One grid step: BN + ReLU + 2x2x2 avg-pool + 1x1x1 conv for `bnd` pooled
    D-slices.

      x_ref     : (bnd, 2, H, Wo, C2) bf16   C2 = 2*C (W-parity merged w/ chans)
      scale_ref : (1, C2) f32   folded BN scale (duplicated for both W parities)
      shift_ref : (1, C2) f32   folded BN shift
      w_ref     : (C2, Km) bf16 conv weight, row-duplicated (W-pair sum) and
                  pre-scaled by 1/8 (avg-pool); Km = Co rounded up to 128
      b_ref     : (1, Km) f32   conv bias (zero padded)
      o_ref     : (R, Co)  f32  R = bnd * Ho * Wo pooled output rows
    """
    scale = scale_ref[...]
    shift = shift_ref[...]
    bnd, _, H, Wo, C2 = x_ref.shape
    Ho = H // 2
    R, Co = o_ref.shape

    # BN + ReLU on both D-parities (explicit f32 upcast: v5e has no bf16 VALU),
    # then the D-pair pooling sum.  Whole block at once -> no per-row Python
    # loop, no unrolled vreg pressure.
    xa = x_ref[:, 0].astype(jnp.float32)                       # (bnd, H, Wo, C2)
    xb = x_ref[:, 1].astype(jnp.float32)
    z = (jnp.maximum(xa * scale + shift, 0.0) +
         jnp.maximum(xb * scale + shift, 0.0))                  # (bnd, H, Wo, C2)

    # H-pair pooling sum: leading-dim split + add (layout free).
    zr = z.reshape(bnd, Ho, 2, Wo, C2)
    p = (zr[:, :, 0] + zr[:, :, 1]).reshape(R, C2)              # (R, C2) f32

    # W-pair sum + channel contraction + 1/8 average factor, all inside ONE
    # block-level MXU matmul (M = R rows amortizes MXU fill/drain).
    y = jnp.dot(p.astype(w_ref.dtype), w_ref[...],
                preferred_element_type=jnp.float32) + b_ref[...]  # (R, Km) f32

    # Store only the real Co columns -> no 8x-padded HBM write when Co << 128.
    o_ref[...] = y[:, :Co].astype(o_ref.dtype)


# ---------------------------------------------------------------------------
# Generation-aware block sizing
# ---------------------------------------------------------------------------
def _round_up(n, m):
    return ((n + m - 1) // m) * m


def _vmem_tile_bytes(shape, itemsize):
    """VMEM footprint with the minor two dims padded to the native
    (sublane, lane) tile for this element width (f32: (8,128), bf16: (16,128))."""
    shape = tuple(shape)
    if len(shape) < 2:
        shape = (1,) * (2 - len(shape)) + shape
    sub = 8 * (4 // itemsize)
    lead = 1
    for d in shape[:-2]:
        lead *= d
    return lead * _round_up(shape[-2], sub) * _round_up(shape[-1], 128) * itemsize


def _block_vmem_bytes(bnd, H, Wo, C2, Co, Km):
    """Conservative VMEM estimate for one grid step (padded tile footprints)."""
    Ho = H // 2
    R = bnd * Ho * Wo
    x_blk = _vmem_tile_bytes((bnd, 2, H, Wo, C2), 2)        # bf16 input block
    o_blk = _vmem_tile_bytes((R, Co), 4)                     # f32 output block
    z_tmp = 2 * _vmem_tile_bytes((bnd, H, Wo, C2), 4)        # BN/ReLU/D-sum temps
    p_tmp = _vmem_tile_bytes((R, C2), 4) + _vmem_tile_bytes((R, C2), 2)
    y_tmp = _vmem_tile_bytes((R, Km), 4)                     # matmul result
    fixed = (_vmem_tile_bytes((C2, Km), 2) + _vmem_tile_bytes((1, Km), 4) +
             2 * _vmem_tile_bytes((1, C2), 4))
    # inputs / outputs are double-buffered by the Pallas pipeline
    return 2 * (x_blk + o_blk + fixed) + z_tmp + p_tmp + y_tmp


def _chip_vmem_config():
    """Returns (block_budget_bytes, vmem_limit_bytes, prefer_even_grid_steps)."""
    kind = ""
    try:
        kind = jax.devices()[0].device_kind.lower()
    except Exception:
        pass
    two_core = any(t in kind for t in ("v7", "7x", "v4", "v5p"))
    if any(t in kind for t in ("v2", "v3")):
        return 8 << 20, 12 << 20, False
    if "v7" in kind or "7x" in kind:
        # 64 MiB VMEM per TensorCore on v7x: stay well clear, even grid steps.
        return 36 << 20, 52 << 20, True
    if any(t in kind for t in ("v4", "v5", "v6")):
        # 128 MiB physical VMEM: take big blocks (main lever for an HBM-bound
        # kernel) and raise the scoped limit explicitly.
        return 88 << 20, 104 << 20, two_core
    # Unknown chip: conservative defaults (safe on anything with >=64 MiB VMEM).
    return 24 << 20, 48 << 20, two_core


def _pick_bnd(ND, H, Wo, C2, Co, Km, budget_bytes, prefer_even_steps):
    """Largest divisor of ND whose block fits the VMEM budget, preferring >=4
    grid steps (pipeline ramp-up) and an even step count on two-core chips."""
    Ho = H // 2
    hw = Ho * Wo

    def aligned(b):
        return (b * hw) % 8 == 0 or b == ND      # output-block sublane rule

    divisors = [b for b in range(1, ND + 1) if ND % b == 0 and aligned(b)]
    feasible = [b for b in divisors
                if _block_vmem_bytes(b, H, Wo, C2, Co, Km) <= budget_bytes]
    if not feasible:
        return min(divisors)                     # smallest legal block; caller asserts

    def good(b):
        steps = ND // b
        if prefer_even_steps and steps > 1 and steps % 2:
            return False
        return steps >= min(4, ND)

    pool = [b for b in feasible if good(b)] or feasible
    return max(pool)


# ---------------------------------------------------------------------------
# Wrapper
# ---------------------------------------------------------------------------
def transition_block(x, gamma, beta, conv_w, conv_b, *, compression, eps=1e-5):
    """Forward pass of TransitionBlock (training-mode BatchNorm3d batch stats).
    x: (N, C, D, H, W) f32.  Returns (N, Co, D//2, H//2, W//2) f32."""
    N, C, D, H, W = x.shape
    Co = conv_w.shape[0]
    assert Co == int(C * compression)
    assert D % 2 == 0 and H % 2 == 0 and W % 2 == 0, "spatial dims must be even"
    Do, Ho, Wo = D // 2, H // 2, W // 2

    # ---- channels-last + bf16 in a single pass (read f32 once, write bf16). ----
    xc = jnp.transpose(x, (0, 2, 3, 4, 1)).astype(jnp.bfloat16)      # (N,D,H,W,C)

    # ---- BatchNorm3d batch stats (biased variance) from the bf16 tensor with
    #      f32 accumulation; the two sibling reductions share one read of xc.
    #      (E[x^2]-mean^2 in f32, clamped; fine for roughly centred inputs.) ----
    cnt = N * D * H * W
    xr = xc.reshape(-1, C).astype(jnp.float32)
    s1 = jnp.sum(xr, axis=0)
    s2 = jnp.sum(xr * xr, axis=0)
    mean = s1 / cnt
    var = jnp.maximum(s2 / cnt - mean * mean, 0.0)
    scale = gamma * jax.lax.rsqrt(var + eps)
    shift = beta - mean * scale

    # ---- free view for the kernel: D-parity leading, W-parity merged with C. ----
    ND, C2 = N * Do, 2 * C
    xv = xc.reshape(ND, 2, H, Wo, C2)
    # Note: for C2 < 128 the BN/ReLU/pool vregs are lane-underfilled; acceptable
    # for small test channels (production DenseNet has C >= 64 -> C2 >= 128).

    # ---- fold avg-pool 1/8 + W-pair sum into the conv weight; pad only the
    #      matmul N dim (Km) to a multiple of 128 (output stays Co wide). ----
    Km = _round_up(Co, 128)
    w2 = jnp.transpose(conv_w.reshape(Co, C)) * (1.0 / 8.0)           # (C, Co)
    w2 = jnp.concatenate([w2, w2], axis=0)                            # (2C, Co)
    w2 = jnp.pad(w2, ((0, 0), (0, Km - Co))).astype(jnp.bfloat16)
    b2 = jnp.pad(conv_b, (0, Km - Co)).reshape(1, Km).astype(jnp.float32)
    scale2 = jnp.concatenate([scale, scale]).reshape(1, C2).astype(jnp.float32)
    shift2 = jnp.concatenate([shift, shift]).reshape(1, C2).astype(jnp.float32)

    # ---- generation-aware block size + VMEM limit. ----
    budget, vmem_limit, even_steps = _chip_vmem_config()
    bnd = _pick_bnd(ND, H, Wo, C2, Co, Km, budget, even_steps)
    blk_bytes = _block_vmem_bytes(bnd, H, Wo, C2, Co, Km)
    assert blk_bytes <= vmem_limit, (
        f"block needs ~{blk_bytes} B VMEM > limit {vmem_limit} B")
    hw = Ho * Wo
    R = bnd * hw
    M = ND * hw
    grid = (ND // bnd,)

    cost = pl.CostEstimate(
        flops=2 * M * C2 * Km,
        transcendentals=0,
        bytes_accessed=ND * 2 * H * Wo * C2 * 2 + M * Co * 4 + C2 * Km * 2)

    out_flat = pl.pallas_call(
        transition_kernel,
        out_shape=jax.ShapeDtypeStruct((M, Co), x.dtype),
        grid_spec=pltpu.PrefetchScalarGridSpec(
            num_scalar_prefetch=0,
            grid=grid,
            in_specs=[
                pl.BlockSpec((bnd, 2, H, Wo, C2), lambda i: (i, 0, 0, 0, 0)),
                pl.BlockSpec((1, C2), lambda i: (0, 0)),
                pl.BlockSpec((1, C2), lambda i: (0, 0)),
                pl.BlockSpec((C2, Km), lambda i: (0, 0)),
                pl.BlockSpec((1, Km), lambda i: (0, 0)),
            ],
            out_specs=pl.BlockSpec((R, Co), lambda i: (i, 0)),
        ),
        compiler_params=pltpu.CompilerParams(
            dimension_semantics=("parallel",),
            vmem_limit_bytes=vmem_limit),
        cost_estimate=cost,
    )(xv, scale2, shift2, w2, b2)

    # (M, Co) -> (N, Co, Do, Ho, Wo).  Small epilogue transpose (output is a
    # fraction of the input size); kept in XLA so the kernel's stores stay
    # contiguous.
    out = out_flat.reshape(N, Do, Ho, Wo, Co)
    return jnp.transpose(out, (0, 4, 1, 2, 3))


# ---------------------------------------------------------------------------
# Pure-JAX reference (training-mode BN, f32 throughout)
# ---------------------------------------------------------------------------
def reference(x, gamma, beta, conv_w, conv_b, eps=1e-5):
    mean = jnp.mean(x, axis=(0, 2, 3, 4), keepdims=True)
    var = jnp.mean((x - mean) ** 2, axis=(0, 2, 3, 4), keepdims=True)
    xn = (x - mean) / jnp.sqrt(var + eps)
    xn = xn * gamma[None, :, None, None, None] + beta[None, :, None, None, None]
    xr = jnp.maximum(xn, 0.0)
    Co = conv_w.shape[0]
    y = jnp.einsum('ncdhw,oc->nodhw', xr, conv_w.reshape(Co, -1))
    y = y + conv_b[None, :, None, None, None]
    N, _, D, H, W = y.shape
    return y.reshape(N, Co, D // 2, 2, H // 2, 2, W // 2, 2).mean(axis=(3, 5, 7))


if __name__ == "__main__":
    N, C, D, H, W = 2, 32, 16, 16, 16
    compression = 0.5
    Co = int(C * compression)

    key = jax.random.PRNGKey(0)
    kx, kg, kb, kw, kc = jax.random.split(key, 5)
    x = jax.random.normal(kx, (N, C, D, H, W), dtype=jnp.float32)
    gamma = 1.0 + 0.1 * jax.random.normal(kg, (C,), dtype=jnp.float32)
    beta = 0.1 * jax.random.normal(kb, (C,), dtype=jnp.float32)
    conv_w = 0.5 * jax.random.normal(kw, (Co, C, 1, 1, 1), dtype=jnp.float32)
    conv_b = 0.1 * jax.random.normal(kc, (Co,), dtype=jnp.float32)

    fwd = jax.jit(functools.partial(transition_block, compression=compression))
    out = jax.block_until_ready(fwd(x, gamma, beta, conv_w, conv_b))

    ref = reference(x, gamma, beta, conv_w, conv_b)
    # bf16 activations + bf16 matmul (f32 accumulation) -> loosened tolerance.
    np.testing.assert_allclose(np.asarray(out), np.asarray(ref),
                               rtol=5e-2, atol=5e-2)
    assert out.shape == (N, Co, D // 2, H // 2, W // 2)

    print("KERNEL_OK")
</pallas_src>

<mosaic_0001>
module attributes {stable_mosaic.version = 11 : i64} {
  func.func @transition_kernel(%arg0: i32, %arg1: memref<4x2x16x8x64xbf16, #tpu.memory_space<vmem>>, %arg2: memref<1x64xf32, #tpu.memory_space<vmem>>, %arg3: memref<1x64xf32, #tpu.memory_space<vmem>>, %arg4: memref<64x128xbf16, #tpu.memory_space<vmem>>, %arg5: memref<1x128xf32, #tpu.memory_space<vmem>>, %arg6: memref<256x16xf32, #tpu.memory_space<vmem>>) attributes {dimension_semantics = [#tpu.dimension_semantics<parallel>], iteration_bounds = array<i64: 4>, scalar_prefetch = 0 : i64, scratch_operands = 0 : i64, tpu.core_type = #tpu.core_type<tc>, window_params = [{transform_indices = @transform_0, window_bounds = array<i64: 4, 2, 16, 8, 64>}, {pipeline_mode = #tpu.pipeline_mode<synchronous>, transform_indices = @transform_1, window_bounds = array<i64: 1, 64>}, {pipeline_mode = #tpu.pipeline_mode<synchronous>, transform_indices = @transform_2, window_bounds = array<i64: 1, 64>}, {pipeline_mode = #tpu.pipeline_mode<synchronous>, transform_indices = @transform_3, window_bounds = array<i64: 64, 128>}, {pipeline_mode = #tpu.pipeline_mode<synchronous>, transform_indices = @transform_4, window_bounds = array<i64: 1, 128>}, {transform_indices = @transform_5, window_bounds = array<i64: 256, 16>}]} {
    %c0 = arith.constant 0 : index
    %c0_0 = arith.constant 0 : index
    %0 = vector.load %arg2[%c0, %c0_0] : memref<1x64xf32, #tpu.memory_space<vmem>>, vector<1x64xf32>
    %c0_1 = arith.constant 0 : index
    %c0_2 = arith.constant 0 : index
    %1 = vector.load %arg3[%c0_1, %c0_2] : memref<1x64xf32, #tpu.memory_space<vmem>>, vector<1x64xf32>
    %c0_3 = arith.constant 0 : index
    %c0_4 = arith.constant 0 : index
    %c0_5 = arith.constant 0 : index
    %c0_6 = arith.constant 0 : index
    %c0_7 = arith.constant 0 : index
    %2 = vector.load %arg1[%c0_3, %c0_4, %c0_5, %c0_6, %c0_7] : memref<4x2x16x8x64xbf16, #tpu.memory_space<vmem>>, vector<4x1x16x8x64xbf16>
    %3 = vector.shape_cast %2 : vector<4x1x16x8x64xbf16> to vector<4x16x8x64xbf16>
    %4 = arith.extf %3 : vector<4x16x8x64xbf16> to vector<4x16x8x64xf32>
    %c0_8 = arith.constant 0 : index
    %c1 = arith.constant 1 : index
    %c0_9 = arith.constant 0 : index
    %c0_10 = arith.constant 0 : index
    %c0_11 = arith.constant 0 : index
    %5 = vector.load %arg1[%c0_8, %c1, %c0_9, %c0_10, %c0_11] : memref<4x2x16x8x64xbf16, #tpu.memory_space<vmem>>, vector<4x1x16x8x64xbf16>
    %6 = vector.shape_cast %5 : vector<4x1x16x8x64xbf16> to vector<4x16x8x64xbf16>
    %7 = arith.extf %6 : vector<4x16x8x64xbf16> to vector<4x16x8x64xf32>
    %8 = vector.shape_cast %0 : vector<1x64xf32> to vector<1x1x1x64xf32>
    %9 = vector.broadcast %8 : vector<1x1x1x64xf32> to vector<4x16x8x64xf32>
    %10 = arith.mulf %4, %9 : vector<4x16x8x64xf32>
    %11 = vector.shape_cast %1 : vector<1x64xf32> to vector<1x1x1x64xf32>
    %12 = vector.broadcast %11 : vector<1x1x1x64xf32> to vector<4x16x8x64xf32>
    %13 = arith.addf %10, %12 : vector<4x16x8x64xf32>
    %cst = arith.constant 0.000000e+00 : f32
    %14 = vector.broadcast %cst : f32 to vector<4x16x8x64xf32>
    %15 = arith.maximumf %13, %14 : vector<4x16x8x64xf32>
    %16 = vector.shape_cast %0 : vector<1x64xf32> to vector<1x1x1x64xf32>
    %17 = vector.broadcast %16 : vector<1x1x1x64xf32> to vector<4x16x8x64xf32>
    %18 = arith.mulf %7, %17 : vector<4x16x8x64xf32>
    %19 = vector.shape_cast %1 : vector<1x64xf32> to vector<1x1x1x64xf32>
    %20 = vector.broadcast %19 : vector<1x1x1x64xf32> to vector<4x16x8x64xf32>
    %21 = arith.addf %18, %20 : vector<4x16x8x64xf32>
    %cst_12 = arith.constant 0.000000e+00 : f32
    %22 = vector.broadcast %cst_12 : f32 to vector<4x16x8x64xf32>
    %23 = arith.maximumf %21, %22 : vector<4x16x8x64xf32>
    %24 = arith.addf %15, %23 : vector<4x16x8x64xf32>
    %25 = vector.shape_cast %24 : vector<4x16x8x64xf32> to vector<4x8x2x8x64xf32>
    %26 = vector.extract_strided_slice %25 {offsets = [0, 0, 0, 0, 0], sizes = [4, 8, 1, 8, 64], strides = [1, 1, 1, 1, 1]} : vector<4x8x2x8x64xf32> to vector<4x8x1x8x64xf32>
    %27 = vector.shape_cast %26 : vector<4x8x1x8x64xf32> to vector<4x8x8x64xf32>
    %28 = vector.extract_strided_slice %25 {offsets = [0, 0, 1, 0, 0], sizes = [4, 8, 1, 8, 64], strides = [1, 1, 1, 1, 1]} : vector<4x8x2x8x64xf32> to vector<4x8x1x8x64xf32>
    %29 = vector.shape_cast %28 : vector<4x8x1x8x64xf32> to vector<4x8x8x64xf32>
    %30 = arith.addf %27, %29 : vector<4x8x8x64xf32>
    %31 = vector.shape_cast %30 : vector<4x8x8x64xf32> to vector<256x64xf32>
    %32 = arith.truncf %31 : vector<256x64xf32> to vector<256x64xbf16>
    %c0_13 = arith.constant 0 : index
    %c0_14 = arith.constant 0 : index
    %33 = vector.load %arg4[%c0_13, %c0_14] : memref<64x128xbf16, #tpu.memory_space<vmem>>, vector<64x128xbf16>
    %cst_15 = arith.constant dense<0.000000e+00> : vector<256x128xf32>
    %34 = tpu.matmul %32, %33, %cst_15 {dimension_numbers = #tpu.dot_dimension_numbers<[1], [0], [0], [1], [0, 0, 1, 1], [], []>} : vector<256x64xbf16>, vector<64x128xbf16>, vector<256x128xf32> -> vector<256x128xf32>
    %c0_16 = arith.constant 0 : index
    %c0_17 = arith.constant 0 : index
    %35 = vector.load %arg5[%c0_16, %c0_17] : memref<1x128xf32, #tpu.memory_space<vmem>>, vector<1x128xf32>
    %36 = vector.broadcast %35 : vector<1x128xf32> to vector<256x128xf32>
    %37 = arith.addf %34, %36 : vector<256x128xf32>
    %38 = vector.extract_strided_slice %37 {offsets = [0, 0], sizes = [256, 16], strides = [1, 1]} : vector<256x128xf32> to vector<256x16xf32>
    %c0_18 = arith.constant 0 : index
    %c0_19 = arith.constant 0 : index
    %39 = vector.load %arg6[%c0_18, %c0_19] : memref<256x16xf32, #tpu.memory_space<vmem>>, vector<256x16xf32>
    tpu.vector_store %arg6[%c0_18, %c0_19], %38 {strides = array<i32>} : memref<256x16xf32, #tpu.memory_space<vmem>>, vector<256x16xf32>,
    return
  }
  func.func @transform_0(%arg0: i32) -> (i32, i32, i32, i32, i32) {
    %c0_i32 = arith.constant 0 : i32
    %c0_i32_0 = arith.constant 0 : i32
    %c0_i32_1 = arith.constant 0 : i32
    %c0_i32_2 = arith.constant 0 : i32
    %c0_i32_3 = arith.constant 0 : i32
    return %arg0, %c0_i32, %c0_i32_0, %c0_i32_1, %c0_i32_2 : i32, i32, i32, i32, i32
  }
  func.func @transform_1(%arg0: i32) -> (i32, i32) {
    %c0_i32 = arith.constant 0 : i32
    %c0_i32_0 = arith.constant 0 : i32
    %c0_i32_1 = arith.constant 0 : i32
    return %c0_i32, %c0_i32_0 : i32, i32
  }
  func.func @transform_2(%arg0: i32) -> (i32, i32) {
    %c0_i32 = arith.constant 0 : i32
    %c0_i32_0 = arith.constant 0 : i32
    %c0_i32_1 = arith.constant 0 : i32
    return %c0_i32, %c0_i32_0 : i32, i32
  }
  func.func @transform_3(%arg0: i32) -> (i32, i32) {
    %c0_i32 = arith.constant 0 : i32
    %c0_i32_0 = arith.constant 0 : i32
    %c0_i32_1 = arith.constant 0 : i32
    return %c0_i32, %c0_i32_0 : i32, i32
  }
  func.func @transform_4(%arg0: i32) -> (i32, i32) {
    %c0_i32 = arith.constant 0 : i32
    %c0_i32_0 = arith.constant 0 : i32
    %c0_i32_1 = arith.constant 0 : i32
    return %c0_i32, %c0_i32_0 : i32, i32
  }
  func.func @transform_5(%arg0: i32) -> (i32, i32) {
    %c0_i32 = arith.constant 0 : i32
    %c0_i32_0 = arith.constant 0 : i32
    return %arg0, %c0_i32 : i32, i32
  }
}

</mosaic_0001>

<bundles_post_ra>
// kernel: transition_block.1
= control target key start
LH: loop header
LB: loop body
LE: loop exit
PB: predicated region body
PF: predicated region fallthrough
CT: control target
= control target key end

     0   :  { %10 = vsyncpa [#allocation3], 0  ;;  %s2568_s0 = inlined_call_operand.vmem [shape: bf16[16,2,16,8,64], index: 0, kind: input, shape index: {}]   ;;  %s2569_s1 = inlined_call_operand.vmem [shape: f32[1,64], index: 1, kind: input, shape index: {}]   ;;  %s2570_s2 = inlined_call_operand.vmem [shape: f32[1,64], index: 2, kind: input, shape index: {}]   ;;  %s2571_s3 = inlined_call_operand.vmem [shape: bf16[64,128], index: 3, kind: input, shape index: {}]   ;;  %s2572_s4 = inlined_call_operand.vmem [shape: f32[1,128], index: 4, kind: input, shape index: {}]   ;;  %s2573_s5 = inlined_call_operand.hbm [shape: f32[1024,16], index: 5, kind: output, shape index: {}]  }
   0x1   :  { %12 = vsyncpa [#allocation3 + $0x1], 0  ;;  %s1988_s18 = smov 0   ;;  %s1990_s19 = smov 0  }
   0x2   :  { %s1992_s20 = smov 0   ;;  %s1994_s21 = smov 0  }
   0x3 LB: > { %s2009_s22 = sadd.s32 4294967295, %s1953_s21   ;;  %s1355_s23 = sadd.s32 4294967294, %s1953_s21   ;;  %s1953_s21 = sphi %s1994_s21, %s2579_s21   ;;  %s1949_s20 = sphi %s1992_s20, %s2578_s20   ;;  %s1945_s19 = sphi %s1990_s19, %s2577_s19   ;;  %s1941_s18 = sphi %s1988_s18, %s2576_s18  }
   0x4   : > { %s2013_s24 = sadd.s32 1, %s1953_s21   ;;  %s135_s25 = sadd.s32 1, %s1949_s20 }
   0x5   : > { %s132_s26 = ssub.s32 %s1953_s21, %s2013_s24  ;;  %p145_p0 = scmp.ne.s32.totalorder %s1949_s20, %s1945_s19 }
   0x6   : > { %p133_p1 = scmp.eq.s32.totalorder %s132_s26, 0  ;;  %p146_p2 = scmp.eq.s32.totalorder %s2009_s22, 3 }
   0x7   : > { %p151_p3 = scmp.ne.s32.totalorder %s1945_s19, %s1941_s18  ;;  %p152_p4 = scmp.eq.s32.totalorder %s1355_s23, 3 }
   0x8   : > { %s2024_s27 = scalar_select %p133_p1, %s1949_s20, %s135_s25  }
   0x9   : > { %p2026_p5 = por %p146_p2, %p145_p0  ;;  %p2030_p6 = por %p152_p4, %p151_p3 }
   0xa   : > { %p1358_p7 = scmp.ge.s32.totalorder %s1953_s21, 1  ;;  %p192_p8 = scmp.lt.s32.totalorder %s1953_s21, 5 }
   0xc   : > { %p193_p9 = pnand %p1358_p7, %p192_p8 }
   0xd   : > { %v1885_v0 = vld [vmem:[%s2571_s3] sm:$0xff] (!%p193_p9)   ;;  %s1360_s7 = sshll.u32 (!%p193_p9), %s2009_s22, 2  ;;  %v1886_v1 = vld [vmem:[%s2571_s3 + $0x8] sm:$0xff] (!%p193_p9)   ;;  %v1887_v2 = vld [vmem:[%s2571_s3 + $0x10] sm:$0xff] (!%p193_p9)   ;;  %vm1036_vm0 = vcmask (!%p193_p9), 523264   ;;  %s218_s10 = sand.u32 (!%p193_p9), 1, %s1945_s19  }
   0xe   : > { %196 = sbr.rel (%p193_p9) target bundleno = 420 (0x1a4), region = 40  ;;  %p222_p10 = scmp.lt.s32.totalorder (!%p193_p9), %s1360_s7, 15  ;;  %1796 = vmatprep.subr.bf16.mxu0 (!%p193_p9), %v1885_v0  ;;  %1836 = vmatprep.subr.bf16.mxu1 (!%p193_p9), %v1885_v0  ;;  %v2054_v3 = vld [vmem:[%s2569_s1] ss:$0 sm:$0xff] (!%p193_p9)  ;;  %v1888_v7 = vld [vmem:[%s2571_s3 + $0x18] sm:$0xff] (!%p193_p9)   ;;  %vm1246_vm1 = vcmask (!%p193_p9), 130048  }
   0xf   : > { %1797 = vmatpush3.bf16.msra.mxu0 (!%p193_p9), %v1885_v0  ;;  %1840 = vmatpush3.bf16.msra.mxu1 (!%p193_p9), %v1885_v0  ;;  %v2067_v14 = vld [vmem:[%s2570_s2] ss:$0 sm:$0xff] (!%p193_p9)  ;;  %s1359_s11 = sshll.u32 (!%p193_p9), %s218_s10, 8  ;;  %s1955_s30 = smov (!%p193_p9), [#allocation2]  }
  0x10   : > { %1798 = vmatprep.subr.bf16.mxu0 (!%p193_p9), %v1886_v1  ;;  %1837 = vmatprep.subr.bf16.mxu1 (!%p193_p9), %v1886_v1  ;;  %s2420_s14 = scalar_lea.vmem (!%p193_p9), [#allocation2], %s1359_s11  ;;  %s1895_s6 = sshll.u32 (!%p193_p9), %s1955_s30, 4  ;;  %s1896_s6 = int_to_ptr.vmem [resolvable:$false] %s1895_s6 }
  0x11   : > { %s1293_s16 = sshll.u32 (!%p193_p9), %s2420_s14, 4  ;;  %s2516_s16 = int_to_ptr.vmem [resolvable:$true] %s1293_s16 }
  0x12   : > { %s1891_s26 = scalar_lea.vmem (!%p193_p9), %s2516_s16, 4096  ;;  %p1898_p0 = scmp.lt.s32.totalorder (!%p193_p9), %s2516_s16, %s1896_s6 }
  0x13   : > { %1799 = vmatpush3.bf16.msra.mxu0 (!%p193_p9), %v1886_v1  ;;  %1841 = vmatpush3.bf16.msra.mxu1 (!%p193_p9), %v1886_v1  ;;  %p1892_p11 = scmp.ne.s32.totalorder (!%p193_p9), %s2516_s16, %s1891_s26 }
  0x14   : > { %1800 = vmatprep.subr.bf16.mxu0 (!%p193_p9), %v1887_v2  ;;  %1838 = vmatprep.subr.bf16.mxu1 (!%p193_p9), %v1887_v2 }
  0x15   : > { %s2581_s7 = smov (!%p222_p10, %s1360_s7), 15  ;;  %p1893_p12 = pnand %p1892_p11, %p2026_p5 }
  0x16   : > { %s1455_s12 = sshll.u32 %s2581_s7, 7  ;;  %s1897_s7 = scalar_lea.vmem %s1896_s6, 8192 }
  0x17   : > { %s2049_s15 = scalar_lea.vmem %s2568_s0, %s1455_s12  ;;  %1801 = vmatpush3.bf16.msra.mxu0 %v1887_v2  ;;  %1842 = vmatpush3.bf16.msra.mxu1 %v1887_v2  ;;  %p1894_p13 = pneg %p1893_p12 }
  0x18   : > { %v1458_v4 = vld [vmem:[%s2049_s15] sm:$0xff]   ;;  %v1713_v5 = vld [vmem:[%s2049_s15 + $0x8] sm:$0xff]   ;;  %1802 = vmatprep.subr.bf16.mxu0 %v1888_v7  ;;  %1839 = vmatprep.subr.bf16.mxu1 %v1888_v7  ;;  %p1899_p1 = scmp.lt.s32.totalorder %s1897_s7, %s1891_s26 }
  0x19   : > { %v1744_v6 = vld [vmem:[%s2049_s15 + $0x40] sm:$0xff]   ;;  %v1459_v8 = vunpack.c.l.bf16 %v1458_v4  ;;  %v1460_v9 = vunpack.c.h.bf16 %v1458_v4  ;;  %v1463_v10 = vunpack.c.l.bf16 %v1713_v5  ;;  %v1464_v11 = vunpack.c.h.bf16 %v1713_v5  ;;  %v1745_v12 = vld [vmem:[%s2049_s15 + $0x48] sm:$0xff]  }
  0x1a   : > { %v1728_v13 = vld [vmem:[%s2049_s15 + $0x100] sm:$0xff]   ;;  %v1587_v15 = vunpack.c.l.bf16 %v1744_v6  ;;  %v1588_v16 = vunpack.c.h.bf16 %v1744_v6  ;;  %v1591_v17 = vunpack.c.l.bf16 %v1745_v12  ;;  %v1592_v18 = vunpack.c.h.bf16 %v1745_v12  ;;  %v1729_v35 = vld [vmem:[%s2049_s15 + $0x108] sm:$0xff]   ;;  %v1715_v12 = vld [vmem:[%s2049_s15 + $0x18] sm:$0xff]   ;;  %p1900_p2 = por %p1899_p1, %p1898_p0 }
  0x1b   : > { %v495_v19 = vmul.f32 %v1459_v8, %v2054_v3  ;;  %v496_v20 = vmul.f32 %v1460_v9, %v2054_v3  ;;  %v497_v21 = vmul.f32 %v1463_v10, %v2054_v3  ;;  %v498_v22 = vmul.f32 %v1464_v11, %v2054_v3  ;;  %v1760_v36 = vld [vmem:[%s2049_s15 + $0x140] sm:$0xff]   ;;  %1803 = vmatpush3.bf16.msra.mxu0 %v1888_v7  ;;  %v1761_v45 = vld [vmem:[%s2049_s15 + $0x148] sm:$0xff]   ;;  %v1714_v11 = vld [vmem:[%s2049_s15 + $0x10] sm:$0xff]  }
  0x1c   : > { %v693_v23 = vmul.f32 %v1587_v15, %v2054_v3  ;;  %v694_v24 = vmul.f32 %v1588_v16, %v2054_v3  ;;  %v695_v25 = vmul.f32 %v1591_v17, %v2054_v3  ;;  %v1523_v26 = vunpack.c.l.bf16 %v1728_v13  ;;  %1843 = vmatpush3.bf16.msra.mxu1 %v1888_v7  ;;  %p1901_p3 = pnand %p1900_p2, %p1894_p13 }
  0x1d   : > { %v565_v27 = vadd.f32 %v2067_v14, %v495_v19  ;;  %v566_v28 = vadd.f32 %v2067_v14, %v496_v20  ;;  %v567_v29 = vadd.f32 %v2067_v14, %v497_v21  ;;  %v1524_v30 = vunpack.c.h.bf16 %v1728_v13 }
  0x1e   : > { %v568_v31 = vadd.f32 %v2067_v14, %v498_v22  ;;  %v696_v32 = vmul.f32 %v1592_v18, %v2054_v3  ;;  %v757_v33 = vadd.f32 %v2067_v14, %v693_v23  ;;  %v758_v34 = vadd.f32 %v2067_v14, %v694_v24  ;;  %v1746_v22 = vld [vmem:[%s2049_s15 + $0x50] sm:$0xff]   ;;  %v1747_v23 = vld [vmem:[%s2049_s15 + $0x58] sm:$0xff]  }
  0x1f   : > { %v629_v37 = vmax.f32 %v565_v27, 0.0  ;;  %v630_v38 = vmax.f32 %v566_v28, 0.0  ;;  %v631_v39 = vmax.f32 %v567_v29, 0.0  ;;  %v759_v40 = vadd.f32 %v2067_v14, %v695_v25 }
  0x20   : > { %v632_v41 = vmax.f32 %v568_v31, 0.0  ;;  %v760_v42 = vadd.f32 %v2067_v14, %v696_v32  ;;  %v821_v43 = vmax.f32 %v757_v33, 0.0  ;;  %v822_v44 = vmax.f32 %v758_v34, 0.0 }
  0x21   : > { %v823_v46 = vmax.f32 %v759_v40, 0.0  ;;  %v1527_v47 = vunpack.c.l.bf16 %v1729_v35  ;;  %v1528_v48 = vunpack.c.h.bf16 %v1729_v35  ;;  %v1651_v49 = vunpack.c.l.bf16 %v1760_v36 }
  0x22   : > { %v824_v50 = vmax.f32 %v760_v42, 0.0  ;;  %v885_v51 = vadd.f32 %v821_v43, %v629_v37  ;;  %v886_v52 = vadd.f32 %v822_v44, %v630_v38  ;;  %v1652_v53 = vunpack.c.h.bf16 %v1760_v36 }
  0x23   : > { %v887_v54 = vadd.f32 %v823_v46, %v631_v39  ;;  %v1655_v55 = vunpack.c.l.bf16 %v1761_v45  ;;  %v1656_v56 = vunpack.c.h.bf16 %v1761_v45  ;;  %v527_v57 = vmul.f32 %v1523_v26, %v2054_v3 }
  0x24   : > { %v888_v58 = vadd.f32 %v824_v50, %v632_v41  ;;  %v949_v59 = vadd.f32 %v886_v52, %v885_v51  ;;  %v528_v60 = vmul.f32 %v1524_v30, %v2054_v3  ;;  %v529_v61 = vmul.f32 %v1527_v47, %v2054_v3  ;;  %v1730_v52 = vld [vmem:[%s2049_s15 + $0x110] sm:$0xff]  }
  0x25   : > { %v530_v62 = vmul.f32 %v1528_v48, %v2054_v3  ;;  %v597_v63 = vadd.f32 %v2067_v14, %v527_v57  ;;  %v725_v0 = vmul.f32 %v1651_v49, %v2054_v3  ;;  %v726_v1 = vmul.f32 %v1652_v53, %v2054_v3  ;;  %v1731_v57 = vld [vmem:[%s2049_s15 + $0x118] sm:$0xff]  }
  0x26   : > { %v950_v2 = vadd.f32 %v888_v58, %v887_v54  ;;  %v598_v4 = vadd.f32 %v2067_v14, %v528_v60  ;;  %v599_v5 = vadd.f32 %v2067_v14, %v529_v61  ;;  %v727_v6 = vmul.f32 %v1655_v55, %v2054_v3 }
  0x27   : > { %v600_v7 = vadd.f32 %v2067_v14, %v530_v62  ;;  %v661_v8 = vmax.f32 %v597_v63, 0.0  ;;  %v728_v9 = vmul.f32 %v1656_v56, %v2054_v3  ;;  %v789_v10 = vadd.f32 %v2067_v14, %v725_v0  ;;  %v1762_v62 = vld [vmem:[%s2049_s15 + $0x150] sm:$0xff]  }
  0x28   : > { %v981_v13 = vpack.c.bf16 %v950_v2, %v949_v59  ;;  %v662_v15 = vmax.f32 %v598_v4, 0.0  ;;  %v663_v16 = vmax.f32 %v599_v5, 0.0  ;;  %v790_v17 = vadd.f32 %v2067_v14, %v726_v1  ;;  %v1763_v4 = vld [vmem:[%s2049_s15 + $0x158] sm:$0xff]  }
  0x29   : > { %v664_v18 = vmax.f32 %v600_v7, 0.0  ;;  %v791_v19 = vadd.f32 %v2067_v14, %v727_v6  ;;  %v792_v20 = vadd.f32 %v2067_v14, %v728_v9  ;;  %v853_v21 = vmax.f32 %v789_v10, 0.0 }
  0x2a   : > { %1804 = vmatprep.mubr.msk.bf16.mxu0 %vm1036_vm0, %v981_v13  ;;  %v854_v24 = vmax.f32 %v790_v17, 0.0  ;;  %v1467_v25 = vunpack.c.l.bf16 %v1714_v11  ;;  %v1468_v26 = vunpack.c.h.bf16 %v1714_v11  ;;  %v1471_v27 = vunpack.c.l.bf16 %v1715_v12 }
  0x2b   : > { %v855_v28 = vmax.f32 %v791_v19, 0.0  ;;  %v856_v29 = vmax.f32 %v792_v20, 0.0  ;;  %v917_v30 = vadd.f32 %v853_v21, %v661_v8  ;;  %v1472_v31 = vunpack.c.h.bf16 %v1715_v12 }
  0x2c   : > { %v918_v32 = vadd.f32 %v854_v24, %v662_v15  ;;  %v1595_v33 = vunpack.c.l.bf16 %v1746_v22  ;;  %v1596_v34 = vunpack.c.h.bf16 %v1746_v22  ;;  %v1599_v35 = vunpack.c.l.bf16 %v1747_v23 }
  0x2d   : > { %v919_v36 = vadd.f32 %v855_v28, %v663_v16  ;;  %v920_v37 = vadd.f32 %v856_v29, %v664_v18  ;;  %v1600_v38 = vunpack.c.h.bf16 %v1747_v23  ;;  %v499_v39 = vmul.f32 %v1467_v25, %v2054_v3 }
  0x2e   : > { %v965_v40 = vadd.f32 %v918_v32, %v917_v30  ;;  %v500_v41 = vmul.f32 %v1468_v26, %v2054_v3  ;;  %v501_v42 = vmul.f32 %v1471_v27, %v2054_v3  ;;  %v502_v43 = vmul.f32 %v1472_v31, %v2054_v3 }
  0x2f   : > { %v966_v44 = vadd.f32 %v920_v37, %v919_v36  ;;  %v569_v45 = vadd.f32 %v2067_v14, %v499_v39  ;;  %v697_v46 = vmul.f32 %v1595_v33, %v2054_v3  ;;  %v698_v47 = vmul.f32 %v1596_v34, %v2054_v3  ;;  %v1716_v34 = vld [vmem:[%s2049_s15 + $0x20] sm:$0xff]   ;;  %v1717_v39 = vld [vmem:[%s2049_s15 + $0x28] sm:$0xff]  }
  0x30   : > { %v570_v48 = vadd.f32 %v2067_v14, %v500_v41  ;;  %v571_v49 = vadd.f32 %v2067_v14, %v501_v42  ;;  %v572_v50 = vadd.f32 %v2067_v14, %v502_v43  ;;  %v699_v51 = vmul.f32 %v1599_v35, %v2054_v3 }
  0x31   : > { %v989_v53 = vpack.c.bf16 %v966_v44, %v965_v40  ;;  %v633_v54 = vmax.f32 %v569_v45, 0.0  ;;  %v700_v55 = vmul.f32 %v1600_v38, %v2054_v3  ;;  %v761_v56 = vadd.f32 %v2067_v14, %v697_v46  ;;  %v1748_v44 = vld [vmem:[%s2049_s15 + $0x60] sm:$0xff]  }
  0x32   : > { %v634_v58 = vmax.f32 %v570_v48, 0.0  ;;  %v635_v59 = vmax.f32 %v571_v49, 0.0  ;;  %v636_v60 = vmax.f32 %v572_v50, 0.0  ;;  %v762_v61 = vadd.f32 %v2067_v14, %v698_v47  ;;  %v1749_v49 = vld [vmem:[%s2049_s15 + $0x68] sm:$0xff]  }
  0x33   : > { %1820 = vmatprep.mubr.msk.bf16.mxu1 %vm1036_vm0, %v989_v53  ;;  %v763_v63 = vadd.f32 %v2067_v14, %v699_v51  ;;  %v764_v0 = vadd.f32 %v2067_v14, %v700_v55  ;;  %v825_v1 = vmax.f32 %v761_v56, 0.0  ;;  %v1531_v2 = vunpack.c.l.bf16 %v1730_v52 }
  0x34   : > { %v826_v5 = vmax.f32 %v762_v61, 0.0  ;;  %v1532_v6 = vunpack.c.h.bf16 %v1730_v52  ;;  %v1535_v7 = vunpack.c.l.bf16 %v1731_v57  ;;  %v1536_v8 = vunpack.c.h.bf16 %v1731_v57 }
  0x35   : > { %v827_v9 = vmax.f32 %v763_v63, 0.0  ;;  %v828_v10 = vmax.f32 %v764_v0, 0.0  ;;  %v889_v11 = vadd.f32 %v825_v1, %v633_v54  ;;  %v1659_v12 = vunpack.c.l.bf16 %v1762_v62 }
  0x36   : > { %v890_v13 = vadd.f32 %v826_v5, %v634_v58  ;;  %v1660_v15 = vunpack.c.h.bf16 %v1762_v62  ;;  %v1663_v16 = vunpack.c.l.bf16 %v1763_v4  ;;  %v1664_v17 = vunpack.c.h.bf16 %v1763_v4 }
  0x37   : > { %v891_v18 = vadd.f32 %v827_v9, %v635_v59  ;;  %v892_v19 = vadd.f32 %v828_v10, %v636_v60  ;;  %v531_v20 = vmul.f32 %v1531_v2, %v2054_v3  ;;  %v532_v21 = vmul.f32 %v1532_v6, %v2054_v3 }
  0x38   : > { %v951_v22 = vadd.f32 %v890_v13, %v889_v11  ;;  %v533_v23 = vmul.f32 %v1535_v7, %v2054_v3  ;;  %v534_v24 = vmul.f32 %v1536_v8, %v2054_v3  ;;  %v729_v25 = vmul.f32 %v1659_v12, %v2054_v3 }
  0x39   : > { %v952_v26 = vadd.f32 %v892_v19, %v891_v18  ;;  %v601_v27 = vadd.f32 %v2067_v14, %v531_v20  ;;  %v602_v28 = vadd.f32 %v2067_v14, %v532_v21  ;;  %v730_v29 = vmul.f32 %v1660_v15, %v2054_v3 }
  0x3a   : > { %v603_v30 = vadd.f32 %v2067_v14, %v533_v23  ;;  %v604_v31 = vadd.f32 %v2067_v14, %v534_v24  ;;  %v731_v32 = vmul.f32 %v1663_v16, %v2054_v3  ;;  %v732_v33 = vmul.f32 %v1664_v17, %v2054_v3  ;;  %v1732_v16 = vld [vmem:[%s2049_s15 + $0x120] sm:$0xff]   ;;  %v1733_v17 = vld [vmem:[%s2049_s15 + $0x128] sm:$0xff]  }
  0x3b   : > { %v982_v35 = vpack.c.bf16 %v952_v26, %v951_v22  ;;  %v665_v36 = vmax.f32 %v601_v27, 0.0  ;;  %v666_v37 = vmax.f32 %v602_v28, 0.0  ;;  %v793_v38 = vadd.f32 %v2067_v14, %v729_v25  ;;  %v1764_v26 = vld [vmem:[%s2049_s15 + $0x160] sm:$0xff]   ;;  %v1765_v27 = vld [vmem:[%s2049_s15 + $0x168] sm:$0xff]  }
  0x3c   : > { %v667_v40 = vmax.f32 %v603_v30, 0.0  ;;  %v668_v41 = vmax.f32 %v604_v31, 0.0  ;;  %v794_v42 = vadd.f32 %v2067_v14, %v730_v29  ;;  %v795_v43 = vadd.f32 %v2067_v14, %v731_v32 }
  0x3d   : > { %1805 = vmatmul.mubr.msk.bf16.vlgmr.msra.gmra.mrb[0].mxu0 %vm1036_vm0, %v982_v35  ;;  %v796_v45 = vadd.f32 %v2067_v14, %v732_v33  ;;  %v857_v46 = vmax.f32 %v793_v38, 0.0  ;;  %v1475_v47 = vunpack.c.l.bf16 %v1716_v34  ;;  %v1476_v48 = vunpack.c.h.bf16 %v1716_v34 }
  0x3e   : > { %v858_v50 = vmax.f32 %v794_v42, 0.0  ;;  %v859_v51 = vmax.f32 %v795_v43, 0.0  ;;  %v1479_v52 = vunpack.c.l.bf16 %v1717_v39  ;;  %v1480_v53 = vunpack.c.h.bf16 %v1717_v39 }
  0x3f   : > { %v860_v54 = vmax.f32 %v796_v45, 0.0  ;;  %v921_v55 = vadd.f32 %v857_v46, %v665_v36  ;;  %v1603_v56 = vunpack.c.l.bf16 %v1748_v44  ;;  %v1604_v57 = vunpack.c.h.bf16 %v1748_v44 }
  0x40   : > { %v922_v58 = vadd.f32 %v858_v50, %v666_v37  ;;  %v923_v59 = vadd.f32 %v859_v51, %v667_v40  ;;  %v1607_v60 = vunpack.c.l.bf16 %v1749_v49  ;;  %v1608_v61 = vunpack.c.h.bf16 %v1749_v49 }
  0x41   : > { %v924_v62 = vadd.f32 %v860_v54, %v668_v41  ;;  %v503_v63 = vmul.f32 %v1475_v47, %v2054_v3  ;;  %v504_v0 = vmul.f32 %v1476_v48, %v2054_v3  ;;  %v505_v1 = vmul.f32 %v1479_v52, %v2054_v3 }
  0x42   : > { %v967_v2 = vadd.f32 %v922_v58, %v921_v55  ;;  %v506_v4 = vmul.f32 %v1480_v53, %v2054_v3  ;;  %v701_v5 = vmul.f32 %v1603_v56, %v2054_v3  ;;  %v702_v6 = vmul.f32 %v1604_v57, %v2054_v3 }
  0x43   : > { %v968_v7 = vadd.f32 %v924_v62, %v923_v59  ;;  %v573_v8 = vadd.f32 %v2067_v14, %v503_v63  ;;  %v574_v9 = vadd.f32 %v2067_v14, %v504_v0  ;;  %v575_v10 = vadd.f32 %v2067_v14, %v505_v1 }
  0x44   : > { %v576_v11 = vadd.f32 %v2067_v14, %v506_v4  ;;  %v703_v12 = vmul.f32 %v1607_v60, %v2054_v3  ;;  %v704_v13 = vmul.f32 %v1608_v61, %v2054_v3  ;;  %v765_v15 = vadd.f32 %v2067_v14, %v701_v5  ;;  %v1718_v60 = vld [vmem:[%s2049_s15 + $0x30] sm:$0xff]   ;;  %v1719_v61 = vld [vmem:[%s2049_s15 + $0x38] sm:$0xff]  }
  0x45   : > { %v990_v18 = vpack.c.bf16 %v968_v7, %v967_v2  ;;  %v637_v19 = vmax.f32 %v573_v8, 0.0  ;;  %v638_v20 = vmax.f32 %v574_v9, 0.0  ;;  %v639_v21 = vmax.f32 %v575_v10, 0.0  ;;  %v1750_v7 = vld [vmem:[%s2049_s15 + $0x70] sm:$0xff]   ;;  %v1751_v8 = vld [vmem:[%s2049_s15 + $0x78] sm:$0xff]  }
  0x46   : > { %v640_v22 = vmax.f32 %v576_v11, 0.0  ;;  %v766_v23 = vadd.f32 %v2067_v14, %v702_v6  ;;  %v767_v24 = vadd.f32 %v2067_v14, %v703_v12  ;;  %v768_v25 = vadd.f32 %v2067_v14, %v704_v13 }
  0x47   : > { %1821 = vmatmul.mubr.msk.bf16.vlgmr.msra.gmra.mrb[0].mxu1 %vm1036_vm0, %v990_v18  ;;  %v829_v28 = vmax.f32 %v765_v15, 0.0  ;;  %v1539_v29 = vunpack.c.l.bf16 %v1732_v16  ;;  %v1540_v30 = vunpack.c.h.bf16 %v1732_v16  ;;  %v1543_v31 = vunpack.c.l.bf16 %v1733_v17 }
  0x48   : > { %v830_v32 = vmax.f32 %v766_v23, 0.0  ;;  %v831_v33 = vmax.f32 %v767_v24, 0.0  ;;  %v832_v34 = vmax.f32 %v768_v25, 0.0  ;;  %v1544_v35 = vunpack.c.h.bf16 %v1733_v17 }
  0x49   : > { %v893_v36 = vadd.f32 %v829_v28, %v637_v19  ;;  %v1667_v37 = vunpack.c.l.bf16 %v1764_v26  ;;  %v1668_v38 = vunpack.c.h.bf16 %v1764_v26  ;;  %v1671_v39 = vunpack.c.l.bf16 %v1765_v27 }
  0x4a   : > { %v894_v40 = vadd.f32 %v830_v32, %v638_v20  ;;  %v895_v41 = vadd.f32 %v831_v33, %v639_v21  ;;  %v896_v42 = vadd.f32 %v832_v34, %v640_v22  ;;  %v1672_v43 = vunpack.c.h.bf16 %v1765_v27 }
  0x4b   : > { %v535_v44 = vmul.f32 %v1539_v29, %v2054_v3  ;;  %v536_v45 = vmul.f32 %v1540_v30, %v2054_v3  ;;  %v537_v46 = vmul.f32 %v1543_v31, %v2054_v3  ;;  %v538_v47 = vmul.f32 %v1544_v35, %v2054_v3 }
  0x4c   : > { %v953_v48 = vadd.f32 %v894_v40, %v893_v36  ;;  %v954_v49 = vadd.f32 %v896_v42, %v895_v41  ;;  %v733_v50 = vmul.f32 %v1667_v37, %v2054_v3  ;;  %v734_v51 = vmul.f32 %v1668_v38, %v2054_v3  ;;  %v1734_v38 = vld [vmem:[%s2049_s15 + $0x130] sm:$0xff]  }
  0x4d   : > { %v605_v52 = vadd.f32 %v2067_v14, %v535_v44  ;;  %v606_v53 = vadd.f32 %v2067_v14, %v536_v45  ;;  %v607_v54 = vadd.f32 %v2067_v14, %v537_v46  ;;  %v608_v55 = vadd.f32 %v2067_v14, %v538_v47 }
  0x4e   : > { %v983_v56 = vpack.c.bf16 %v954_v49, %v953_v48  ;;  %v735_v57 = vmul.f32 %v1671_v39, %v2054_v3  ;;  %v736_v58 = vmul.f32 %v1672_v43, %v2054_v3  ;;  %v797_v59 = vadd.f32 %v2067_v14, %v733_v50  ;;  %v1735_v43 = vld [vmem:[%s2049_s15 + $0x138] sm:$0xff]   ;;  %v1766_v48 = vld [vmem:[%s2049_s15 + $0x170] sm:$0xff]  }
  0x4f   : > { %v669_v62 = vmax.f32 %v605_v52, 0.0  ;;  %v670_v63 = vmax.f32 %v606_v53, 0.0  ;;  %v671_v0 = vmax.f32 %v607_v54, 0.0  ;;  %v672_v1 = vmax.f32 %v608_v55, 0.0  ;;  %v1767_v53 = vld [vmem:[%s2049_s15 + $0x178] sm:$0xff]  }
  0x50   : > { %1808 = vmatprep.mubr.msk.bf16.mxu0 %vm1036_vm0, %v983_v56  ;;  %v798_v2 = vadd.f32 %v2067_v14, %v734_v51  ;;  %v799_v4 = vadd.f32 %v2067_v14, %v735_v57  ;;  %v800_v5 = vadd.f32 %v2067_v14, %v736_v58  ;;  %v861_v6 = vmax.f32 %v797_v59, 0.0 }
  0x51   : > { %v1483_v9 = vunpack.c.l.bf16 %v1718_v60  ;;  %v1484_v10 = vunpack.c.h.bf16 %v1718_v60  ;;  %v1487_v11 = vunpack.c.l.bf16 %v1719_v61  ;;  %v1488_v12 = vunpack.c.h.bf16 %v1719_v61 }
  0x52   : > { %v862_v13 = vmax.f32 %v798_v2, 0.0  ;;  %v863_v15 = vmax.f32 %v799_v4, 0.0  ;;  %v864_v16 = vmax.f32 %v800_v5, 0.0  ;;  %v925_v17 = vadd.f32 %v861_v6, %v669_v62 }
  0x53   : > { %v1611_v18 = vunpack.c.l.bf16 %v1750_v7  ;;  %v1612_v19 = vunpack.c.h.bf16 %v1750_v7  ;;  %v1615_v20 = vunpack.c.l.bf16 %v1751_v8  ;;  %v1616_v21 = vunpack.c.h.bf16 %v1751_v8 }
  0x54   : > { %v926_v22 = vadd.f32 %v862_v13, %v670_v63  ;;  %v927_v23 = vadd.f32 %v863_v15, %v671_v0  ;;  %v928_v24 = vadd.f32 %v864_v16, %v672_v1  ;;  %v507_v25 = vmul.f32 %v1483_v9, %v2054_v3 }
  0x55   : > { %v508_v26 = vmul.f32 %v1484_v10, %v2054_v3  ;;  %v509_v27 = vmul.f32 %v1487_v11, %v2054_v3  ;;  %v510_v28 = vmul.f32 %v1488_v12, %v2054_v3  ;;  %v705_v29 = vmul.f32 %v1611_v18, %v2054_v3 }
  0x56   : > { %v969_v30 = vadd.f32 %v926_v22, %v925_v17  ;;  %v970_v31 = vadd.f32 %v928_v24, %v927_v23  ;;  %v577_v32 = vadd.f32 %v2067_v14, %v507_v25  ;;  %v706_v33 = vmul.f32 %v1612_v19, %v2054_v3  ;;  %v1721_v25 = vld [vmem:[%s2049_s15 + $0x88] sm:$0xff]  }
  0x57   : > { %v578_v34 = vadd.f32 %v2067_v14, %v508_v26  ;;  %v579_v35 = vadd.f32 %v2067_v14, %v509_v27  ;;  %v580_v36 = vadd.f32 %v2067_v14, %v510_v28  ;;  %v707_v37 = vmul.f32 %v1615_v20, %v2054_v3  ;;  %v1720_v20 = vld [vmem:[%s2049_s15 + $0x80] sm:$0xff]  }
  0x58   : > { %v991_v39 = vpack.c.bf16 %v970_v31, %v969_v30  ;;  %v641_v40 = vmax.f32 %v577_v32, 0.0  ;;  %v708_v41 = vmul.f32 %v1616_v21, %v2054_v3  ;;  %v769_v42 = vadd.f32 %v2067_v14, %v705_v29  ;;  %v1752_v30 = vld [vmem:[%s2049_s15 + $0xc0] sm:$0xff]  }
  0x59   : > { %v642_v44 = vmax.f32 %v578_v34, 0.0  ;;  %v643_v45 = vmax.f32 %v579_v35, 0.0  ;;  %v644_v46 = vmax.f32 %v580_v36, 0.0  ;;  %v770_v47 = vadd.f32 %v2067_v14, %v706_v33  ;;  %v1753_v35 = vld [vmem:[%s2049_s15 + $0xc8] sm:$0xff]  }
  0x5a   : > { %1824 = vmatprep.mubr.msk.bf16.mxu1 %vm1036_vm0, %v991_v39  ;;  %v771_v49 = vadd.f32 %v2067_v14, %v707_v37  ;;  %v772_v50 = vadd.f32 %v2067_v14, %v708_v41  ;;  %v833_v51 = vmax.f32 %v769_v42, 0.0  ;;  %v1547_v52 = vunpack.c.l.bf16 %v1734_v38 }
  0x5b   : > { %v834_v54 = vmax.f32 %v770_v47, 0.0  ;;  %v1548_v55 = vunpack.c.h.bf16 %v1734_v38  ;;  %v1551_v56 = vunpack.c.l.bf16 %v1735_v43  ;;  %v1552_v57 = vunpack.c.h.bf16 %v1735_v43 }
  0x5c   : > { %v835_v58 = vmax.f32 %v771_v49, 0.0  ;;  %v836_v59 = vmax.f32 %v772_v50, 0.0  ;;  %v897_v60 = vadd.f32 %v833_v51, %v641_v40  ;;  %v1675_v61 = vunpack.c.l.bf16 %v1766_v48 }
  0x5d   : > { %v898_v62 = vadd.f32 %v834_v54, %v642_v44  ;;  %v1676_v63 = vunpack.c.h.bf16 %v1766_v48  ;;  %v1679_v0 = vunpack.c.l.bf16 %v1767_v53  ;;  %v1680_v1 = vunpack.c.h.bf16 %v1767_v53 }
  0x5e   : > { %v899_v2 = vadd.f32 %v835_v58, %v643_v45  ;;  %v900_v4 = vadd.f32 %v836_v59, %v644_v46  ;;  %v539_v5 = vmul.f32 %v1547_v52, %v2054_v3  ;;  %v540_v6 = vmul.f32 %v1548_v55, %v2054_v3 }
  0x5f   : > { %v955_v7 = vadd.f32 %v898_v62, %v897_v60  ;;  %v541_v8 = vmul.f32 %v1551_v56, %v2054_v3  ;;  %v542_v9 = vmul.f32 %v1552_v57, %v2054_v3  ;;  %v737_v10 = vmul.f32 %v1675_v61, %v2054_v3 }
  0x60   : > { %v956_v11 = vadd.f32 %v900_v4, %v899_v2  ;;  %v609_v12 = vadd.f32 %v2067_v14, %v539_v5  ;;  %v610_v13 = vadd.f32 %v2067_v14, %v540_v6  ;;  %v738_v15 = vmul.f32 %v1676_v63, %v2054_v3 }
  0x61   : > { %v611_v16 = vadd.f32 %v2067_v14, %v541_v8  ;;  %v612_v17 = vadd.f32 %v2067_v14, %v542_v9  ;;  %v739_v18 = vmul.f32 %v1679_v0, %v2054_v3  ;;  %v740_v19 = vmul.f32 %v1680_v1, %v2054_v3  ;;  %v1736_v0 = vld [vmem:[%s2049_s15 + $0x180] sm:$0xff]   ;;  %v1737_v1 = vld [vmem:[%s2049_s15 + $0x188] sm:$0xff]  }
  0x62   : > { %v984_v21 = vpack.c.bf16 %v956_v11, %v955_v7  ;;  %v673_v22 = vmax.f32 %v609_v12, 0.0  ;;  %v674_v23 = vmax.f32 %v610_v13, 0.0  ;;  %v801_v24 = vadd.f32 %v2067_v14, %v737_v10  ;;  %v1768_v11 = vld [vmem:[%s2049_s15 + $0x1c0] sm:$0xff]   ;;  %v1769_v12 = vld [vmem:[%s2049_s15 + $0x1c8] sm:$0xff]  }
  0x63   : > { %v675_v26 = vmax.f32 %v611_v16, 0.0  ;;  %v676_v27 = vmax.f32 %v612_v17, 0.0  ;;  %v802_v28 = vadd.f32 %v2067_v14, %v738_v15  ;;  %v803_v29 = vadd.f32 %v2067_v14, %v739_v18 }
  0x64   : > { %1809 = vmatmul.mubr.msk.bf16.gmra.mrb[4].mxu0 %vm1036_vm0, %v984_v21  ;;  %v804_v31 = vadd.f32 %v2067_v14, %v740_v19  ;;  %v865_v32 = vmax.f32 %v801_v24, 0.0  ;;  %v1491_v33 = vunpack.c.l.bf16 %v1720_v20  ;;  %v1492_v34 = vunpack.c.h.bf16 %v1720_v20 }
  0x65   : > { %v866_v36 = vmax.f32 %v802_v28, 0.0  ;;  %v867_v37 = vmax.f32 %v803_v29, 0.0  ;;  %v1495_v38 = vunpack.c.l.bf16 %v1721_v25  ;;  %v1496_v39 = vunpack.c.h.bf16 %v1721_v25 }
  0x66   : > { %v868_v40 = vmax.f32 %v804_v31, 0.0  ;;  %v929_v41 = vadd.f32 %v865_v32, %v673_v22  ;;  %v1619_v42 = vunpack.c.l.bf16 %v1752_v30  ;;  %v1620_v43 = vunpack.c.h.bf16 %v1752_v30 }
  0x67   : > { %v930_v44 = vadd.f32 %v866_v36, %v674_v23  ;;  %v931_v45 = vadd.f32 %v867_v37, %v675_v26  ;;  %v1623_v46 = vunpack.c.l.bf16 %v1753_v35  ;;  %v1624_v47 = vunpack.c.h.bf16 %v1753_v35 }
  0x68   : > { %v932_v48 = vadd.f32 %v868_v40, %v676_v27  ;;  %v511_v49 = vmul.f32 %v1491_v33, %v2054_v3  ;;  %v512_v50 = vmul.f32 %v1492_v34, %v2054_v3  ;;  %v513_v51 = vmul.f32 %v1495_v38, %v2054_v3 }
  0x69   : > { %v971_v52 = vadd.f32 %v930_v44, %v929_v41  ;;  %v514_v53 = vmul.f32 %v1496_v39, %v2054_v3  ;;  %v709_v54 = vmul.f32 %v1619_v42, %v2054_v3  ;;  %v710_v55 = vmul.f32 %v1620_v43, %v2054_v3 }
  0x6a   : > { %v972_v56 = vadd.f32 %v932_v48, %v931_v45  ;;  %v581_v57 = vadd.f32 %v2067_v14, %v511_v49  ;;  %v582_v58 = vadd.f32 %v2067_v14, %v512_v50  ;;  %v583_v59 = vadd.f32 %v2067_v14, %v513_v51 }
  0x6b   : > { %v584_v60 = vadd.f32 %v2067_v14, %v514_v53  ;;  %v711_v61 = vmul.f32 %v1623_v46, %v2054_v3  ;;  %v712_v62 = vmul.f32 %v1624_v47, %v2054_v3  ;;  %v773_v63 = vadd.f32 %v2067_v14, %v709_v54  ;;  %v1722_v46 = vld [vmem:[%s2049_s15 + $0x90] sm:$0xff]   ;;  %v1723_v47 = vld [vmem:[%s2049_s15 + $0x98] sm:$0xff]  }
  0x6c   : > { %v992_v2 = vpack.c.bf16 %v972_v56, %v971_v52  ;;  %v645_v4 = vmax.f32 %v581_v57, 0.0  ;;  %v646_v5 = vmax.f32 %v582_v58, 0.0  ;;  %v647_v6 = vmax.f32 %v583_v59, 0.0  ;;  %v1754_v56 = vld [vmem:[%s2049_s15 + $0xd0] sm:$0xff]   ;;  %v1755_v57 = vld [vmem:[%s2049_s15 + $0xd8] sm:$0xff]  }
  0x6d   : > { %v648_v7 = vmax.f32 %v584_v60, 0.0  ;;  %v774_v8 = vadd.f32 %v2067_v14, %v710_v55  ;;  %v775_v9 = vadd.f32 %v2067_v14, %v711_v61  ;;  %v776_v10 = vadd.f32 %v2067_v14, %v712_v62 }
  0x6e   : > { %1825 = vmatmul.mubr.msk.bf16.gmra.mrb[4].mxu1 %vm1036_vm0, %v992_v2  ;;  %v837_v13 = vmax.f32 %v773_v63, 0.0  ;;  %v1555_v15 = vunpack.c.l.bf16 %v1736_v0  ;;  %v1556_v16 = vunpack.c.h.bf16 %v1736_v0  ;;  %v1559_v17 = vunpack.c.l.bf16 %v1737_v1 }
  0x6f   : > { %v838_v18 = vmax.f32 %v774_v8, 0.0  ;;  %v839_v19 = vmax.f32 %v775_v9, 0.0  ;;  %v840_v20 = vmax.f32 %v776_v10, 0.0  ;;  %v1560_v21 = vunpack.c.h.bf16 %v1737_v1 }
  0x70   : > { %v901_v22 = vadd.f32 %v837_v13, %v645_v4  ;;  %v1683_v23 = vunpack.c.l.bf16 %v1768_v11  ;;  %v1684_v24 = vunpack.c.h.bf16 %v1768_v11  ;;  %v1687_v25 = vunpack.c.l.bf16 %v1769_v12 }
  0x71   : > { %v902_v26 = vadd.f32 %v838_v18, %v646_v5  ;;  %v903_v27 = vadd.f32 %v839_v19, %v647_v6  ;;  %v904_v28 = vadd.f32 %v840_v20, %v648_v7  ;;  %v1688_v29 = vunpack.c.h.bf16 %v1769_v12 }
  0x72   : > { %v543_v30 = vmul.f32 %v1555_v15, %v2054_v3  ;;  %v544_v31 = vmul.f32 %v1556_v16, %v2054_v3  ;;  %v545_v32 = vmul.f32 %v1559_v17, %v2054_v3  ;;  %v546_v33 = vmul.f32 %v1560_v21, %v2054_v3 }
  0x73   : > { %v957_v34 = vadd.f32 %v902_v26, %v901_v22  ;;  %v958_v35 = vadd.f32 %v904_v28, %v903_v27  ;;  %v741_v36 = vmul.f32 %v1683_v23, %v2054_v3  ;;  %v742_v37 = vmul.f32 %v1684_v24, %v2054_v3  ;;  %v1738_v24 = vld [vmem:[%s2049_s15 + $0x190] sm:$0xff]  }
  0x74   : > { %v613_v38 = vadd.f32 %v2067_v14, %v543_v30  ;;  %v614_v39 = vadd.f32 %v2067_v14, %v544_v31  ;;  %v615_v40 = vadd.f32 %v2067_v14, %v545_v32  ;;  %v616_v41 = vadd.f32 %v2067_v14, %v546_v33 }
  0x75   : > { %v985_v42 = vpack.c.bf16 %v958_v35, %v957_v34  ;;  %v743_v43 = vmul.f32 %v1687_v25, %v2054_v3  ;;  %v744_v44 = vmul.f32 %v1688_v29, %v2054_v3  ;;  %v805_v45 = vadd.f32 %v2067_v14, %v741_v36  ;;  %v1739_v29 = vld [vmem:[%s2049_s15 + $0x198] sm:$0xff]   ;;  %v1770_v34 = vld [vmem:[%s2049_s15 + $0x1d0] sm:$0xff]  }
  0x76   : > { %v677_v48 = vmax.f32 %v613_v38, 0.0  ;;  %v678_v49 = vmax.f32 %v614_v39, 0.0  ;;  %v679_v50 = vmax.f32 %v615_v40, 0.0  ;;  %v680_v51 = vmax.f32 %v616_v41, 0.0  ;;  %v1771_v39 = vld [vmem:[%s2049_s15 + $0x1d8] sm:$0xff]  }
  0x77   : > { %1812 = vmatprep.mubr.msk.bf16.mxu0 %vm1036_vm0, %v985_v42  ;;  %v806_v52 = vadd.f32 %v2067_v14, %v742_v37  ;;  %v807_v53 = vadd.f32 %v2067_v14, %v743_v43  ;;  %v808_v54 = vadd.f32 %v2067_v14, %v744_v44  ;;  %v869_v55 = vmax.f32 %v805_v45, 0.0 }
  0x78   : > { %v1499_v58 = vunpack.c.l.bf16 %v1722_v46  ;;  %v1500_v59 = vunpack.c.h.bf16 %v1722_v46  ;;  %v1503_v60 = vunpack.c.l.bf16 %v1723_v47  ;;  %v1504_v61 = vunpack.c.h.bf16 %v1723_v47 }
  0x79   : > { %v870_v62 = vmax.f32 %v806_v52, 0.0  ;;  %v871_v63 = vmax.f32 %v807_v53, 0.0  ;;  %v872_v0 = vmax.f32 %v808_v54, 0.0  ;;  %v933_v1 = vadd.f32 %v869_v55, %v677_v48 }
  0x7a   : > { %v1627_v2 = vunpack.c.l.bf16 %v1754_v56  ;;  %v1628_v4 = vunpack.c.h.bf16 %v1754_v56  ;;  %v1631_v5 = vunpack.c.l.bf16 %v1755_v57  ;;  %v1632_v6 = vunpack.c.h.bf16 %v1755_v57 }
  0x7b   : > { %v934_v7 = vadd.f32 %v870_v62, %v678_v49  ;;  %v935_v8 = vadd.f32 %v871_v63, %v679_v50  ;;  %v936_v9 = vadd.f32 %v872_v0, %v680_v51  ;;  %v515_v10 = vmul.f32 %v1499_v58, %v2054_v3  ;;  %v2308_v63 = vld [vmem:[%s2569_s1] ss:$0 sm:$0xff] }
  0x7c   : > { %v516_v11 = vmul.f32 %v1500_v59, %v2054_v3  ;;  %v517_v12 = vmul.f32 %v1503_v60, %v2054_v3  ;;  %v518_v13 = vmul.f32 %v1504_v61, %v2054_v3  ;;  %v713_v15 = vmul.f32 %v1627_v2, %v2054_v3 }
  0x7d   : > { %v973_v16 = vadd.f32 %v934_v7, %v933_v1  ;;  %v974_v17 = vadd.f32 %v936_v9, %v935_v8  ;;  %v585_v18 = vadd.f32 %v2067_v14, %v515_v10  ;;  %v714_v19 = vmul.f32 %v1628_v4, %v2054_v3  ;;  %v1725_v10 = vld [vmem:[%s2049_s15 + $0xa8] sm:$0xff]  }
  0x7e   : > { %v586_v20 = vadd.f32 %v2067_v14, %v516_v11  ;;  %v587_v21 = vadd.f32 %v2067_v14, %v517_v12  ;;  %v588_v22 = vadd.f32 %v2067_v14, %v518_v13  ;;  %v715_v23 = vmul.f32 %v1631_v5, %v2054_v3  ;;  %v1724_v5 = vld [vmem:[%s2049_s15 + $0xa0] sm:$0xff]  }
  0x7f   : > { %v993_v25 = vpack.c.bf16 %v974_v17, %v973_v16  ;;  %v649_v26 = vmax.f32 %v585_v18, 0.0  ;;  %v716_v27 = vmul.f32 %v1632_v6, %v2054_v3  ;;  %v777_v28 = vadd.f32 %v2067_v14, %v713_v15  ;;  %v2321_v13 = vld [vmem:[%s2570_s2] ss:$0 sm:$0xff] }
  0x80   : > { %v650_v30 = vmax.f32 %v586_v20, 0.0  ;;  %v651_v31 = vmax.f32 %v587_v21, 0.0  ;;  %v652_v32 = vmax.f32 %v588_v22, 0.0  ;;  %v778_v33 = vadd.f32 %v2067_v14, %v714_v19  ;;  %v1756_v17 = vld [vmem:[%s2049_s15 + $0xe0] sm:$0xff]   ;;  %v1757_v21 = vld [vmem:[%s2049_s15 + $0xe8] sm:$0xff]  }
  0x81   : > { %1828 = vmatprep.mubr.msk.bf16.mxu1 %vm1036_vm0, %v993_v25  ;;  %v779_v35 = vadd.f32 %v2067_v14, %v715_v23  ;;  %v780_v36 = vadd.f32 %v2067_v14, %v716_v27  ;;  %v841_v37 = vmax.f32 %v777_v28, 0.0  ;;  %v1563_v38 = vunpack.c.l.bf16 %v1738_v24 }
  0x82   : > { %v842_v40 = vmax.f32 %v778_v33, 0.0  ;;  %v1564_v41 = vunpack.c.h.bf16 %v1738_v24  ;;  %v1567_v42 = vunpack.c.l.bf16 %v1739_v29  ;;  %v1568_v43 = vunpack.c.h.bf16 %v1739_v29 }
  0x83   : > { %v843_v44 = vmax.f32 %v779_v35, 0.0  ;;  %v844_v45 = vmax.f32 %v780_v36, 0.0  ;;  %v905_v46 = vadd.f32 %v841_v37, %v649_v26  ;;  %v1691_v47 = vunpack.c.l.bf16 %v1770_v34 }
  0x84   : > { %v906_v48 = vadd.f32 %v842_v40, %v650_v30  ;;  %v1692_v49 = vunpack.c.h.bf16 %v1770_v34  ;;  %v1695_v50 = vunpack.c.l.bf16 %v1771_v39  ;;  %v1696_v51 = vunpack.c.h.bf16 %v1771_v39 }
  0x85   : > { %v907_v52 = vadd.f32 %v843_v44, %v651_v31  ;;  %v908_v53 = vadd.f32 %v844_v45, %v652_v32  ;;  %v547_v54 = vmul.f32 %v1563_v38, %v2054_v3  ;;  %v548_v55 = vmul.f32 %v1564_v41, %v2054_v3 }
  0x86   : > { %v959_v56 = vadd.f32 %v906_v48, %v905_v46  ;;  %v549_v57 = vmul.f32 %v1567_v42, %v2054_v3  ;;  %v550_v58 = vmul.f32 %v1568_v43, %v2054_v3  ;;  %v745_v59 = vmul.f32 %v1691_v47, %v2054_v3 }
  0x87   : > { %v960_v60 = vadd.f32 %v908_v53, %v907_v52  ;;  %v617_v61 = vadd.f32 %v2067_v14, %v547_v54  ;;  %v618_v62 = vadd.f32 %v2067_v14, %v548_v55  ;;  %v746_v0 = vmul.f32 %v2308_v63, %v1692_v49 }
  0x88   : > { %v619_v1 = vadd.f32 %v2067_v14, %v549_v57  ;;  %v620_v2 = vadd.f32 %v2067_v14, %v550_v58  ;;  %v747_v4 = vmul.f32 %v2308_v63, %v1695_v50  ;;  %v748_v3 = vmul.f32 %v2308_v63, %v1696_v51  ;;  %v1740_v50 = vld [vmem:[%s2049_s15 + $0x1a0] sm:$0xff]   ;;  %v1741_v51 = vld [vmem:[%s2049_s15 + $0x1a8] sm:$0xff]  }
  0x89   : > { %v986_v6 = vpack.c.bf16 %v960_v60, %v959_v56  ;;  %v681_v7 = vmax.f32 %v617_v61, 0.0  ;;  %v682_v8 = vmax.f32 %v618_v62, 0.0  ;;  %v809_v9 = vadd.f32 %v2067_v14, %v745_v59  ;;  %v1772_v60 = vld [vmem:[%s2049_s15 + $0x1e0] sm:$0xff]   ;;  %v1773_v61 = vld [vmem:[%s2049_s15 + $0x1e8] sm:$0xff]  }
  0x8a   : > { %v683_v11 = vmax.f32 %v619_v1, 0.0  ;;  %v684_v12 = vmax.f32 %v620_v2, 0.0  ;;  %v810_v15 = vadd.f32 %v2321_v13, %v746_v0  ;;  %v811_v16 = vadd.f32 %v2321_v13, %v747_v4 }
  0x8b   : > { %1813 = vmatmul.mubr.msk.bf16.gmra.mrb[8].mxu0 %vm1036_vm0, %v986_v6  ;;  %v812_v18 = vadd.f32 %v2321_v13, %v748_v3  ;;  %v873_v19 = vmax.f32 %v809_v9, 0.0  ;;  %v1507_v20 = vunpack.c.l.bf16 %v1724_v5  ;;  %v1508_v14 = vunpack.c.h.bf16 %v1724_v5 }
  0x8c   : > { %v874_v22 = vmax.f32 %v810_v15, 0.0  ;;  %v875_v23 = vmax.f32 %v811_v16, 0.0  ;;  %v1511_v24 = vunpack.c.l.bf16 %v1725_v10  ;;  %v1512_v25 = vunpack.c.h.bf16 %v1725_v10 }
  0x8d   : > { %v876_v26 = vmax.f32 %v812_v18, 0.0  ;;  %v937_v27 = vadd.f32 %v873_v19, %v681_v7  ;;  %v1635_v28 = vunpack.c.l.bf16 %v1756_v17  ;;  %v1636_v29 = vunpack.c.h.bf16 %v1756_v17 }
  0x8e   : > { %v938_v30 = vadd.f32 %v874_v22, %v682_v8  ;;  %v939_v31 = vadd.f32 %v875_v23, %v683_v11  ;;  %v1639_v32 = vunpack.c.l.bf16 %v1757_v21  ;;  %v1640_v33 = vunpack.c.h.bf16 %v1757_v21 }
  0x8f   : > { %v940_v34 = vadd.f32 %v876_v26, %v684_v12  ;;  %v519_v35 = vmul.f32 %v2308_v63, %v1507_v20  ;;  %v520_v36 = vmul.f32 %v2308_v63, %v1508_v14  ;;  %v521_v37 = vmul.f32 %v2308_v63, %v1511_v24 }
  0x90   : > { %v975_v38 = vadd.f32 %v938_v30, %v937_v27  ;;  %v522_v39 = vmul.f32 %v2308_v63, %v1512_v25  ;;  %v717_v40 = vmul.f32 %v2308_v63, %v1635_v28  ;;  %v718_v41 = vmul.f32 %v2308_v63, %v1636_v29 }
  0x91   : > { %v976_v42 = vadd.f32 %v940_v34, %v939_v31  ;;  %v589_v43 = vadd.f32 %v2321_v13, %v519_v35  ;;  %v590_v44 = vadd.f32 %v2321_v13, %v520_v36  ;;  %v591_v45 = vadd.f32 %v2321_v13, %v521_v37 }
  0x92   : > { %v592_v46 = vadd.f32 %v2321_v13, %v522_v39  ;;  %v719_v47 = vmul.f32 %v2308_v63, %v1639_v32  ;;  %v720_v48 = vmul.f32 %v2308_v63, %v1640_v33  ;;  %v781_v49 = vadd.f32 %v2321_v13, %v717_v40  ;;  %v1726_v32 = vld [vmem:[%s2049_s15 + $0xb0] sm:$0xff]   ;;  %v1727_v33 = vld [vmem:[%s2049_s15 + $0xb8] sm:$0xff]  }
  0x93   : > { %v994_v52 = vpack.c.bf16 %v976_v42, %v975_v38  ;;  %v653_v53 = vmax.f32 %v589_v43, 0.0  ;;  %v654_v54 = vmax.f32 %v590_v44, 0.0  ;;  %v655_v55 = vmax.f32 %v591_v45, 0.0  ;;  %v1758_v42 = vld [vmem:[%s2049_s15 + $0xf0] sm:$0xff]   ;;  %v1759_v43 = vld [vmem:[%s2049_s15 + $0xf8] sm:$0xff]  }
  0x94   : > { %v656_v56 = vmax.f32 %v592_v46, 0.0  ;;  %v782_v57 = vadd.f32 %v2321_v13, %v718_v41  ;;  %v783_v58 = vadd.f32 %v2321_v13, %v719_v47  ;;  %v784_v59 = vadd.f32 %v2321_v13, %v720_v48 }
  0x95   : > { %1829 = vmatmul.mubr.msk.bf16.gmra.mrb[8].mxu1 %vm1036_vm0, %v994_v52  ;;  %v845_v62 = vmax.f32 %v781_v49, 0.0  ;;  %v1571_v0 = vunpack.c.l.bf16 %v1740_v50  ;;  %v1572_v1 = vunpack.c.h.bf16 %v1740_v50  ;;  %v1575_v2 = vunpack.c.l.bf16 %v1741_v51 }
  0x96   : > { %v846_v4 = vmax.f32 %v782_v57, 0.0  ;;  %v847_v3 = vmax.f32 %v783_v58, 0.0  ;;  %v848_v5 = vmax.f32 %v784_v59, 0.0  ;;  %v1576_v6 = vunpack.c.h.bf16 %v1741_v51 }
  0x97   : > { %v909_v7 = vadd.f32 %v845_v62, %v653_v53  ;;  %v1699_v8 = vunpack.c.l.bf16 %v1772_v60  ;;  %v1700_v9 = vunpack.c.h.bf16 %v1772_v60  ;;  %v1703_v10 = vunpack.c.l.bf16 %v1773_v61 }
  0x98   : > { %v910_v11 = vadd.f32 %v846_v4, %v654_v54  ;;  %v911_v12 = vadd.f32 %v847_v3, %v655_v55  ;;  %v912_v15 = vadd.f32 %v848_v5, %v656_v56  ;;  %v1704_v16 = vunpack.c.h.bf16 %v1773_v61 }
  0x99   : > { %v551_v17 = vmul.f32 %v2308_v63, %v1571_v0  ;;  %v552_v18 = vmul.f32 %v2308_v63, %v1572_v1  ;;  %v553_v19 = vmul.f32 %v2308_v63, %v1575_v2  ;;  %v554_v20 = vmul.f32 %v2308_v63, %v1576_v6 }
  0x9a   : > { %v961_v14 = vadd.f32 %v910_v11, %v909_v7  ;;  %v962_v21 = vadd.f32 %v912_v15, %v911_v12  ;;  %v749_v22 = vmul.f32 %v2308_v63, %v1699_v8  ;;  %v750_v23 = vmul.f32 %v2308_v63, %v1700_v9  ;;  %v1742_v9 = vld [vmem:[%s2049_s15 + $0x1b0] sm:$0xff]  }
  0x9b   : > { %v621_v24 = vadd.f32 %v2321_v13, %v551_v17  ;;  %v622_v25 = vadd.f32 %v2321_v13, %v552_v18  ;;  %v623_v26 = vadd.f32 %v2321_v13, %v553_v19  ;;  %v624_v27 = vadd.f32 %v2321_v13, %v554_v20 }
  0x9c   : > { %v987_v28 = vpack.c.bf16 %v962_v21, %v961_v14  ;;  %v751_v29 = vmul.f32 %v2308_v63, %v1703_v10  ;;  %v752_v30 = vmul.f32 %v2308_v63, %v1704_v16  ;;  %v813_v31 = vadd.f32 %v2321_v13, %v749_v22  ;;  %v1743_v16 = vld [vmem:[%s2049_s15 + $0x1b8] sm:$0xff]   ;;  %v1774_v14 = vld [vmem:[%s2049_s15 + $0x1f0] sm:$0xff]  }
  0x9d   : > { %v685_v34 = vmax.f32 %v621_v24, 0.0  ;;  %v686_v35 = vmax.f32 %v622_v25, 0.0  ;;  %v687_v36 = vmax.f32 %v623_v26, 0.0  ;;  %v688_v37 = vmax.f32 %v624_v27, 0.0  ;;  %v1775_v25 = vld [vmem:[%s2049_s15 + $0x1f8] sm:$0xff]   ;;  %s1456_s15 = sshll.u32 %s2009_s22, 12 }
  0x9e   : > { %1816 = vmatprep.mubr.msk.bf16.mxu0 %vm1036_vm0, %v987_v28  ;;  %v814_v38 = vadd.f32 %v2321_v13, %v750_v23  ;;  %v815_v39 = vadd.f32 %v2321_v13, %v751_v29  ;;  %v816_v40 = vadd.f32 %v2321_v13, %v752_v30  ;;  %v877_v41 = vmax.f32 %v813_v31, 0.0  ;;  %s2514_s25 = scalar_lea.hbm %s2573_s5, %s1456_s15  ;;  %s2527_s22 = scalar_lea.sflag [#allocation3], %s218_s10 }
  0x9f   : > { %v1515_v44 = vunpack.c.l.bf16 %v1726_v32  ;;  %v1516_v45 = vunpack.c.h.bf16 %v1726_v32  ;;  %v1519_v46 = vunpack.c.l.bf16 %v1727_v33  ;;  %v1520_v47 = vunpack.c.h.bf16 %v1727_v33 }
  0xa0   : > { %v878_v48 = vmax.f32 %v814_v38, 0.0  ;;  %v879_v49 = vmax.f32 %v815_v39, 0.0  ;;  %v880_v50 = vmax.f32 %v816_v40, 0.0  ;;  %v941_v51 = vadd.f32 %v877_v41, %v685_v34 }
  0xa1   : > { %v1643_v52 = vunpack.c.l.bf16 %v1758_v42  ;;  %v1644_v53 = vunpack.c.h.bf16 %v1758_v42  ;;  %v1647_v54 = vunpack.c.l.bf16 %v1759_v43  ;;  %v1648_v55 = vunpack.c.h.bf16 %v1759_v43 }
  0xa2   : > { %v942_v56 = vadd.f32 %v878_v48, %v686_v35  ;;  %v943_v57 = vadd.f32 %v879_v49, %v687_v36  ;;  %v944_v58 = vadd.f32 %v880_v50, %v688_v37  ;;  %v523_v59 = vmul.f32 %v2308_v63, %v1515_v44 }
  0xa3   : > { %v524_v60 = vmul.f32 %v2308_v63, %v1516_v45  ;;  %v525_v61 = vmul.f32 %v2308_v63, %v1519_v46  ;;  %v526_v62 = vmul.f32 %v2308_v63, %v1520_v47  ;;  %v721_v0 = vmul.f32 %v2308_v63, %v1643_v52 }
  0xa4   : > { %v977_v1 = vadd.f32 %v942_v56, %v941_v51  ;;  %v978_v2 = vadd.f32 %v944_v58, %v943_v57  ;;  %v593_v4 = vadd.f32 %v2321_v13, %v523_v59  ;;  %v722_v3 = vmul.f32 %v2308_v63, %v1644_v53 }
  0xa5   : > { %v594_v5 = vadd.f32 %v2321_v13, %v524_v60  ;;  %v595_v6 = vadd.f32 %v2321_v13, %v525_v61  ;;  %v596_v7 = vadd.f32 %v2321_v13, %v526_v62  ;;  %v723_v8 = vmul.f32 %v2308_v63, %v1647_v54 }
  0xa6   : > { %v995_v10 = vpack.c.bf16 %v978_v2, %v977_v1  ;;  %v657_v11 = vmax.f32 %v593_v4, 0.0  ;;  %v724_v12 = vmul.f32 %v2308_v63, %v1648_v55  ;;  %v785_v15 = vadd.f32 %v2321_v13, %v721_v0 }
  0xa7   : > { %v658_v17 = vmax.f32 %v594_v5, 0.0  ;;  %v659_v18 = vmax.f32 %v595_v6, 0.0  ;;  %v660_v19 = vmax.f32 %v596_v7, 0.0  ;;  %v786_v20 = vadd.f32 %v2321_v13, %v722_v3 }
  0xa8   : > { %1832 = vmatprep.mubr.msk.bf16.mxu1 %vm1036_vm0, %v995_v10  ;;  %v787_v21 = vadd.f32 %v2321_v13, %v723_v8  ;;  %v788_v22 = vadd.f32 %v2321_v13, %v724_v12  ;;  %v849_v23 = vmax.f32 %v785_v15, 0.0  ;;  %v1579_v24 = vunpack.c.l.bf16 %v1742_v9 }
  0xa9   : > { %v850_v26 = vmax.f32 %v786_v20, 0.0  ;;  %v1580_v27 = vunpack.c.h.bf16 %v1742_v9  ;;  %v1583_v28 = vunpack.c.l.bf16 %v1743_v16  ;;  %v1584_v29 = vunpack.c.h.bf16 %v1743_v16 }
  0xaa   : > { %v851_v30 = vmax.f32 %v787_v21, 0.0  ;;  %v852_v31 = vmax.f32 %v788_v22, 0.0  ;;  %v913_v32 = vadd.f32 %v849_v23, %v657_v11  ;;  %v1707_v33 = vunpack.c.l.bf16 %v1774_v14 }
  0xab   : > { %v914_v34 = vadd.f32 %v850_v26, %v658_v17  ;;  %v1708_v35 = vunpack.c.h.bf16 %v1774_v14  ;;  %v1711_v36 = vunpack.c.l.bf16 %v1775_v25  ;;  %v1712_v37 = vunpack.c.h.bf16 %v1775_v25 }
  0xac   : > { %v915_v38 = vadd.f32 %v851_v30, %v659_v18  ;;  %v916_v39 = vadd.f32 %v852_v31, %v660_v19  ;;  %v555_v40 = vmul.f32 %v2308_v63, %v1579_v24  ;;  %v556_v41 = vmul.f32 %v2308_v63, %v1580_v27 }
  0xad   : > { %v963_v42 = vadd.f32 %v914_v34, %v913_v32  ;;  %v557_v43 = vmul.f32 %v2308_v63, %v1583_v28  ;;  %v558_v44 = vmul.f32 %v2308_v63, %v1584_v29  ;;  %v753_v45 = vmul.f32 %v2308_v63, %v1707_v33 }
  0xae   : > { %v964_v46 = vadd.f32 %v916_v39, %v915_v38  ;;  %v625_v47 = vadd.f32 %v2321_v13, %v555_v40  ;;  %v626_v48 = vadd.f32 %v2321_v13, %v556_v41  ;;  %v754_v49 = vmul.f32 %v2308_v63, %v1708_v35 }
  0xaf   : > { %v627_v50 = vadd.f32 %v2321_v13, %v557_v43  ;;  %v628_v51 = vadd.f32 %v2321_v13, %v558_v44  ;;  %v755_v52 = vmul.f32 %v2308_v63, %v1711_v36  ;;  %v756_v53 = vmul.f32 %v2308_v63, %v1712_v37 }
  0xb0   : > { %v988_v54 = vpack.c.bf16 %v964_v46, %v963_v42  ;;  %v689_v55 = vmax.f32 %v625_v47, 0.0  ;;  %v817_v56 = vadd.f32 %v2321_v13, %v753_v45  ;;  %v690_v57 = vmax.f32 %v626_v48, 0.0 }
  0xb1   : > { %v691_v58 = vmax.f32 %v627_v50, 0.0  ;;  %v818_v59 = vadd.f32 %v2321_v13, %v754_v49  ;;  %v819_v60 = vadd.f32 %v2321_v13, %v755_v52  ;;  %v692_v61 = vmax.f32 %v628_v51, 0.0 }
  0xb2   : > { %1817 = vmatmul.mubr.msk.bf16.gmra.mrb[12].mxu0 %vm1036_vm0, %v988_v54  ;;  %v820_v62 = vadd.f32 %v2321_v13, %v756_v53  ;;  %v881_v0 = vmax.f32 %v817_v56, 0.0  ;;  %v2416_v13 = vld [vmem:[%s2572_s4] ss:$0 sm:$0xff] }
  0xb3   : > { %v882_v1 = vmax.f32 %v818_v59, 0.0  ;;  %v883_v63 = vmax.f32 %v819_v60, 0.0 }
  0xb4   : > { %v884_v2 = vmax.f32 %v820_v62, 0.0  ;;  %v945_v4 = vadd.f32 %v881_v0, %v689_v55 }
  0xb5   : > { %v946_v3 = vadd.f32 %v882_v1, %v690_v57  ;;  %v947_v5 = vadd.f32 %v883_v63, %v691_v58 }
  0xb6   : > { %v948_v6 = vadd.f32 %v884_v2, %v692_v61 }
  0xb7   : > { %v979_v7 = vadd.f32 %v946_v3, %v945_v4 }
  0xb8   : > { %v980_v8 = vadd.f32 %v948_v6, %v947_v5 }
  0xba   : > { %v996_v9 = vpack.c.bf16 %v980_v8, %v979_v7 }
  0xbc   : > { %1833 = vmatmul.mubr.msk.bf16.gmra.mrb[12].mxu1 %vm1036_vm0, %v996_v9 }
 0x110   : > { %v1806_v10 = vpop.f32.mrb[0].mxu0 }
 0x111   : > { %v1128_v11 = vadd.f32 %v1806_v10, %v2416_v13  ;;  %v1119_v12 = vpop.f32.mrb[1].mxu0 }
 0x112   : > { %v1120_v15 = vadd.f32 %v2416_v13, %v1119_v12  ;;  %v1807_v16 = vpop.f32.mrb[2].mxu0 }
 0x113   : > { %1249 = vst.msk [vmem:[%s2420_s14 + $0x10] sm:$0xff] %vm1246_vm1, %v1128_v11  ;;  %v1131_v17 = vadd.f32 %v1807_v16, %v2416_v13  ;;  %v1122_v18 = vpop.f32.mrb[3].mxu0 }
 0x114   : > { %1247 = vst.msk [vmem:[%s2420_s14] sm:$0xff] %vm1246_vm1, %v1120_v15  ;;  %v1123_v19 = vadd.f32 %v2416_v13, %v1122_v18 }
 0x115   : > { %1250 = vst.msk [vmem:[%s2420_s14 + $0x18] sm:$0xff] %vm1246_vm1, %v1131_v17 }
 0x116   : > { %1248 = vst.msk [vmem:[%s2420_s14 + $0x8] sm:$0xff] %vm1246_vm1, %v1123_v19 }
 0x11a   : > { %v1822_v20 = vpop.f32.mrb[0].mxu1 }
 0x11b   : > { %v1192_v14 = vadd.f32 %v1822_v20, %v2416_v13  ;;  %v1183_v21 = vpop.f32.mrb[1].mxu1 }
 0x11c   : > { %v1184_v22 = vadd.f32 %v2416_v13, %v1183_v21  ;;  %v1823_v23 = vpop.f32.mrb[2].mxu1 }
 0x11d   : > { %1265 = vst.msk [vmem:[%s2420_s14 + $0x90] sm:$0xff] %vm1246_vm1, %v1192_v14  ;;  %v1195_v24 = vadd.f32 %v1823_v23, %v2416_v13  ;;  %v1186_v25 = vpop.f32.mrb[3].mxu1 }
 0x11e   : > { %1263 = vst.msk [vmem:[%s2420_s14 + $0x80] sm:$0xff] %vm1246_vm1, %v1184_v22  ;;  %v1187_v26 = vadd.f32 %v2416_v13, %v1186_v25 }
 0x11f   : > { %1266 = vst.msk [vmem:[%s2420_s14 + $0x98] sm:$0xff] %vm1246_vm1, %v1195_v24 }
 0x120   : > { %1264 = vst.msk [vmem:[%s2420_s14 + $0x88] sm:$0xff] %vm1246_vm1, %v1187_v26 }
 0x137   : > { %v1810_v27 = vpop.f32.mrb[4].mxu0 }
 0x138   : > { %v1144_v28 = vadd.f32 %v1810_v27, %v2416_v13  ;;  %v1135_v29 = vpop.f32.mrb[5].mxu0 }
 0x139   : > { %v1136_v30 = vadd.f32 %v2416_v13, %v1135_v29  ;;  %v1811_v31 = vpop.f32.mrb[6].mxu0 }
 0x13a   : > { %1253 = vst.msk [vmem:[%s2420_s14 + $0x30] sm:$0xff] %vm1246_vm1, %v1144_v28  ;;  %v1147_v32 = vadd.f32 %v1811_v31, %v2416_v13  ;;  %v1138_v33 = vpop.f32.mrb[7].mxu0 }
 0x13b   : > { %1251 = vst.msk [vmem:[%s2420_s14 + $0x20] sm:$0xff] %vm1246_vm1, %v1136_v30  ;;  %v1139_v34 = vadd.f32 %v2416_v13, %v1138_v33 }
 0x13c   : > { %1254 = vst.msk [vmem:[%s2420_s14 + $0x38] sm:$0xff] %vm1246_vm1, %v1147_v32 }
 0x13d   : > { %1252 = vst.msk [vmem:[%s2420_s14 + $0x28] sm:$0xff] %vm1246_vm1, %v1139_v34 }
 0x141   : > { %v1826_v35 = vpop.f32.mrb[4].mxu1 }
 0x142   : > { %v1208_v36 = vadd.f32 %v1826_v35, %v2416_v13  ;;  %v1199_v37 = vpop.f32.mrb[5].mxu1 }
 0x143   : > { %v1200_v38 = vadd.f32 %v2416_v13, %v1199_v37  ;;  %v1827_v39 = vpop.f32.mrb[6].mxu1 }
 0x144   : > { %1269 = vst.msk [vmem:[%s2420_s14 + $0xb0] sm:$0xff] %vm1246_vm1, %v1208_v36  ;;  %v1211_v40 = vadd.f32 %v1827_v39, %v2416_v13  ;;  %v1202_v41 = vpop.f32.mrb[7].mxu1 }
 0x145   : > { %1267 = vst.msk [vmem:[%s2420_s14 + $0xa0] sm:$0xff] %vm1246_vm1, %v1200_v38  ;;  %v1203_v42 = vadd.f32 %v2416_v13, %v1202_v41 }
 0x146   : > { %1270 = vst.msk [vmem:[%s2420_s14 + $0xb8] sm:$0xff] %vm1246_vm1, %v1211_v40 }
 0x147   : > { %1268 = vst.msk [vmem:[%s2420_s14 + $0xa8] sm:$0xff] %vm1246_vm1, %v1203_v42 }
 0x15e   : > { %v1814_v43 = vpop.f32.mrb[8].mxu0 }
 0x15f   : > { %v1160_v44 = vadd.f32 %v1814_v43, %v2416_v13  ;;  %v1151_v45 = vpop.f32.mrb[9].mxu0 }
 0x160   : > { %v1152_v46 = vadd.f32 %v2416_v13, %v1151_v45  ;;  %v1815_v47 = vpop.f32.mrb[10].mxu0 }
 0x161   : > { %1257 = vst.msk [vmem:[%s2420_s14 + $0x50] sm:$0xff] %vm1246_vm1, %v1160_v44  ;;  %v1163_v48 = vadd.f32 %v1815_v47, %v2416_v13  ;;  %v1154_v49 = vpop.f32.mrb[11].mxu0 }
 0x162   : > { %1255 = vst.msk [vmem:[%s2420_s14 + $0x40] sm:$0xff] %vm1246_vm1, %v1152_v46  ;;  %v1155_v50 = vadd.f32 %v2416_v13, %v1154_v49 }
 0x163   : > { %1258 = vst.msk [vmem:[%s2420_s14 + $0x58] sm:$0xff] %vm1246_vm1, %v1163_v48 }
 0x164   : > { %1256 = vst.msk [vmem:[%s2420_s14 + $0x48] sm:$0xff] %vm1246_vm1, %v1155_v50 }
 0x168   : > { %v1830_v51 = vpop.f32.mrb[8].mxu1 }
 0x169   : > { %v1224_v52 = vadd.f32 %v1830_v51, %v2416_v13  ;;  %v1215_v53 = vpop.f32.mrb[9].mxu1 }
 0x16a   : > { %v1216_v54 = vadd.f32 %v2416_v13, %v1215_v53  ;;  %v1831_v55 = vpop.f32.mrb[10].mxu1 }
 0x16b   : > { %1273 = vst.msk [vmem:[%s2420_s14 + $0xd0] sm:$0xff] %vm1246_vm1, %v1224_v52  ;;  %v1227_v56 = vadd.f32 %v1831_v55, %v2416_v13  ;;  %v1218_v57 = vpop.f32.mrb[11].mxu1 }
 0x16c   : > { %1271 = vst.msk [vmem:[%s2420_s14 + $0xc0] sm:$0xff] %vm1246_vm1, %v1216_v54  ;;  %v1219_v58 = vadd.f32 %v2416_v13, %v1218_v57 }
 0x16d   : > { %1274 = vst.msk [vmem:[%s2420_s14 + $0xd8] sm:$0xff] %vm1246_vm1, %v1227_v56 }
 0x16e   : > { %1272 = vst.msk [vmem:[%s2420_s14 + $0xc8] sm:$0xff] %vm1246_vm1, %v1219_v58 }
 0x185   : > { %v1818_v59 = vpop.f32.mrb[12].mxu0 }
 0x186   : > { %v1176_v60 = vadd.f32 %v1818_v59, %v2416_v13  ;;  %v1167_v61 = vpop.f32.mrb[13].mxu0 }
 0x187   : > { %v1168_v62 = vadd.f32 %v2416_v13, %v1167_v61  ;;  %v1819_v0 = vpop.f32.mrb[14].mxu0 }
 0x188   : > { %1261 = vst.msk [vmem:[%s2420_s14 + $0x70] sm:$0xff] %vm1246_vm1, %v1176_v60  ;;  %v1179_v1 = vadd.f32 %v1819_v0, %v2416_v13  ;;  %v1170_v63 = vpop.f32.mrb[15].mxu0 }
 0x189   : > { %1259 = vst.msk [vmem:[%s2420_s14 + $0x60] sm:$0xff] %vm1246_vm1, %v1168_v62  ;;  %v1171_v2 = vadd.f32 %v2416_v13, %v1170_v63 }
 0x18a   : > { %1262 = vst.msk [vmem:[%s2420_s14 + $0x78] sm:$0xff] %vm1246_vm1, %v1179_v1 }
 0x18b   : > { %1260 = vst.msk [vmem:[%s2420_s14 + $0x68] sm:$0xff] %vm1246_vm1, %v1171_v2 }
 0x18f   : > { %v1834_v4 = vpop.f32.mrb[12].mxu1 }
 0x190   : > { %v1240_v3 = vadd.f32 %v1834_v4, %v2416_v13  ;;  %v1231_v5 = vpop.f32.mrb[13].mxu1 }
 0x191   : > { %v1232_v6 = vadd.f32 %v2416_v13, %v1231_v5  ;;  %v1835_v7 = vpop.f32.mrb[14].mxu1 }
 0x192   : > { %1277 = vst.msk [vmem:[%s2420_s14 + $0xf0] sm:$0xff] %vm1246_vm1, %v1240_v3  ;;  %v1243_v8 = vadd.f32 %v1835_v7, %v2416_v13  ;;  %v1234_v9 = vpop.f32.mrb[15].mxu1 }
 0x193   : > { %1275 = vst.msk [vmem:[%s2420_s14 + $0xe0] sm:$0xff] %vm1246_vm1, %v1232_v6  ;;  %v1235_v10 = vadd.f32 %v2416_v13, %v1234_v9 }
 0x194   : > { %1278 = vst.msk [vmem:[%s2420_s14 + $0xf8] sm:$0xff] %vm1246_vm1, %v1243_v8 }
 0x195   : > { %1276 = vst.msk [vmem:[%s2420_s14 + $0xe8] sm:$0xff] %vm1246_vm1, %v1235_v10 }
 0x196   : > { %1904 = shalt.err (!%p1901_p3)
}
 0x197   : > { %s1905_s8 = scalar_lea.hbm %s2514_s25, 4096  ;;  %s1909_s11 = scalar_lea.hbm %s2573_s5, 16384 }
 0x198   : > { %p1906_p4 = scmp.ne.s32.totalorder %s2514_s25, %s1905_s8  ;;  %p1910_p9 = scmp.lt.u32.totalorder %s2514_s25, %s2573_s5 }
 0x199   : > { %p1911_p10 = scmp.lt.u32.totalorder %s1909_s11, %s1905_s8  ;;  %p1913_p12 = scmp.lt.u32.totalorder %s1905_s8, %s2514_s25 }
 0x19a   : > { %p1907_p7 = pnand %p1906_p4, %p2026_p5 }
 0x19b   : > { %p1912_p11 = por %p1911_p10, %p1910_p9 }
 0x19c   : > { %p1908_p8 = pneg %p1907_p7 }
 0x19d   : > { %p1914_p13 = por %p1913_p12, %p1912_p11 }
 0x19f   : > { %p1915_p0 = pnand %p1914_p13, %p1908_p8 }
 0x1a1   : > { %1918 = shalt.err (!%p1915_p0)
}
 0x1a2   : > { %s1956_s14 = smov 128   ;;  %s1957_s15 = smov 8  }
 0x1a3   : > { %1844 = dma.vmem_to_hbm [thread:$0]  (%p2026_p5), %s2516_s16, 4096, %s2514_s25, %s2527_s22, %s1956_s14, %s1956_s14, %s1957_s15  }
 0x1a4 PF: > { %p1850_p1 = scmp.ge.s32.totalorder %s1953_s21, 2  ;;  %s1308_s17 = sand.u32 1, %s1941_s18  }
 0x1a5   : > { %s1309_s23 = scalar_lea.sflag [#allocation3], %s1308_s17 }
 0x1a6   : > { %p1847_p2 = pnand %p1850_p1, %p2030_p6 }
 0x1a8   : > { %1936 = dma.done.wait (!%p1847_p2), %s1309_s23, 4096  }
 0x1a9   : > { %1938 = vsyncadd (!%p1847_p2), %s1309_s23, 4294963200  ;;  %p15_p3 = scmp.ge.s32.totalorder %s2013_s24, 6   ;;  %s2576_s18 = smov %s1945_s19 }
 0x1aa   : > { %s2577_s19 = smov %s1949_s20  ;;  %s2578_s20 = smov %s2024_s27 }
 0x1ab   : > { %s2579_s21 = smov %s2013_s24  ;;  %17 = sbr.rel (!%p15_p3) target bundleno = 3 (0x3), region = 76 }
 0x1b2   :  { %1314 = vsyncpa [#allocation3], 1 }
 0x1b3   :  { %1316 = vsyncpa [#allocation3 + $0x1], 1 }

</bundles_post_ra>
